<compile_context>
chip_gen: v6e
topology: v6e:2x2x1
jax: 0.10.0
libtpu: 0.0.40
codegen_flags: <defaults>
</compile_context>

<pallas_src>
import math
import jax
import jax.numpy as jnp
from jax.experimental import pallas as pl
from jax.experimental.pallas import tpu as pltpu


def make_context_adapter_kernel(num_heads, eps=1e-5, approx_recip=True):
    def kernel(x_ref, wqkv_ref, wo_ref, bqkv_ref, bo_ref,
               gamma_ref, beta_ref, o_ref):
        x = x_ref[0]                               # (S, E) f32 activation block
        S, E = x.shape
        H = num_heads
        hd = E // H
        cdt = wqkv_ref.dtype                       # MXU operand dtype (bf16 / f32)

        # Fused in-projection: (S, E) @ (E, 3E) -> (S, 3E), f32 accumulation.
        # Softmax scale is pre-folded into the q columns of w_qkv / b_qkv (host).
        qkv = jnp.dot(x.astype(cdt), wqkv_ref[...],
                      preferred_element_type=jnp.float32) + bqkv_ref[...]
        qkv_c = qkv.astype(cdt)

        # Heads stay in (S, E) lane layout; static lane slices per head (no
        # (H, S, hd) relayout).  The head merge is fused into the output
        # projection by accumulating each head through wo[h*hd:(h+1)*hd, :].
        attn = jnp.zeros((S, E), jnp.float32)
        for h in range(H):
            lo = h * hd
            q_h = qkv_c[:, lo:lo + hd]                       # (S, hd)
            k_h = qkv_c[:, E + lo:E + lo + hd]               # (S, hd)
            v_h = qkv_c[:, 2 * E + lo:2 * E + lo + hd]       # (S, hd)

            s_h = jnp.einsum('qd,kd->qk', q_h, k_h,
                             preferred_element_type=jnp.float32)   # (S, S) f32
            s_h = s_h - jnp.max(s_h, axis=-1, keepdims=True)
            p_h = jnp.exp(s_h)                                      # unnormalized
            l_h = jnp.sum(p_h, axis=-1, keepdims=True)              # (S, 1)

            o_h = jnp.dot(p_h.astype(cdt), v_h,
                          preferred_element_type=jnp.float32)       # (S, hd) f32
            # Normalize AFTER P@V: S*hd elements instead of S*S.
            o_h = o_h * pl.reciprocal(l_h, approx=approx_recip)

            # Fused head-merge + output projection (Wo pre-transposed to (in, out)).
            attn = attn + jnp.dot(o_h.astype(cdt), wo_ref[lo:lo + hd, :],
                                  preferred_element_type=jnp.float32)

        attn = attn + bo_ref[...]

        # Residual + LayerNorm (all f32, two-pass mean/variance like nn.LayerNorm).
        y = attn + x
        mean = jnp.mean(y, axis=-1, keepdims=True)
        yc = y - mean
        var = jnp.mean(yc * yc, axis=-1, keepdims=True)
        o_ref[0] = (yc * jax.lax.rsqrt(var + eps) * gamma_ref[...]
                    + beta_ref[...]).astype(o_ref.dtype)

    return kernel


def _vmem_limit_bytes(S, E, H, compute_dtype):
    """Rough, padded working-set estimate (double-buffered activations, weights,
    one head's scores/temporaries), with headroom; clamped to a safe range."""
    itemsize = jnp.dtype(compute_dtype).itemsize
    rup = lambda n, m: ((n + m - 1) // m) * m
    Sp, Ep, E3p = rup(S, 8), rup(E, 128), rup(3 * E, 128)
    hdp = rup(E // H, 128)                               # lane padding when hd < 128
    act = Sp * Ep * 4                                    # one (S, E) f32 block
    weights = (Ep * E3p + Ep * Ep) * itemsize + (E3p + 3 * Ep) * 4
    qkv = Sp * E3p * (4 + itemsize)                      # f32 qkv + cdt copy
    per_head = 2 * Sp * rup(S, 128) * 4 + 4 * Sp * hdp * 4
    total = 2 * 2 * act + 2 * weights + qkv + per_head + act
    return int(min(max(2 * total, 32 << 20), 56 << 20))


def _build_adapter_call(B, S, E, H, compute_dtype, approx_recip,
                        single_buffer_weights):
    kernel = make_context_adapter_kernel(H, approx_recip=approx_recip)

    def const_spec(shape):
        # Constant across the batch grid -> single-buffered to reclaim VMEM.
        index_map = (lambda b, n=len(shape): (0,) * n)
        if single_buffer_weights:
            return pl.BlockSpec(shape, index_map, pipeline_mode=pl.Buffered(1))
        return pl.BlockSpec(shape, index_map)

    act_spec = pl.BlockSpec((1, S, E), lambda b: (b, 0, 0))
    in_specs = [act_spec,
                const_spec((E, 3 * E)),     # w_qkv (pre-transposed, scale folded)
                const_spec((E, E)),         # w_o   (pre-transposed)
                const_spec((1, 3 * E)),     # b_qkv
                const_spec((1, E)),         # b_o
                const_spec((1, E)),         # gamma
                const_spec((1, E))]         # beta

    itemsize = jnp.dtype(compute_dtype).itemsize
    hd = E // H
    flops = 2 * B * (S * E * 3 * E + 2 * H * S * S * hd + S * E * E)
    transcendentals = B * H * S * S
    bytes_accessed = (2 * B * S * E * 4
                      + (E * 3 * E + E * E) * itemsize
                      + 6 * E * 4)

    return pl.pallas_call(
        kernel,
        out_shape=jax.ShapeDtypeStruct((B, S, E), jnp.float32),
        grid_spec=pltpu.PrefetchScalarGridSpec(
            num_scalar_prefetch=0,
            grid=(B,),
            in_specs=in_specs,
            out_specs=act_spec,
        ),
        compiler_params=pltpu.CompilerParams(
            dimension_semantics=("parallel",),
            vmem_limit_bytes=_vmem_limit_bytes(S, E, H, compute_dtype)),
        cost_estimate=pl.CostEstimate(flops=flops,
                                      transcendentals=transcendentals,
                                      bytes_accessed=bytes_accessed),
    )


def context_adapter(x, params, num_heads, compute_dtype=jnp.bfloat16,
                    approx_recip=True):
    """Pallas TPU implementation of ContextAdapter.forward (MHA + residual + LN)."""
    B, S, E = x.shape
    hd = E // num_heads
    scale = 1.0 / math.sqrt(hd)

    # Host-side packing (traced once by XLA outside the kernel):
    #   * softmax scale folded into Wq / bq,
    #   * Wq/Wk/Wv concatenated into the PyTorch-style (3E, E) in_proj weight and
    #     pre-transposed to (E, 3E),
    #   * Wo pre-transposed to (in, out),
    #   * MXU weight operands cast to compute dtype (softmax / LN stay f32).
    w_qkv = jnp.concatenate([params["wq"] * scale, params["wk"], params["wv"]],
                            axis=0).T.astype(compute_dtype)          # (E, 3E)
    b_qkv = jnp.concatenate([params["bq"] * scale, params["bk"], params["bv"]],
                            axis=1)                                   # (1, 3E) f32
    w_o = params["wo"].T.astype(compute_dtype)                        # (E, E)

    args = (x, w_qkv, w_o, b_qkv, params["bo"], params["gamma"], params["beta"])

    # Try single-buffered weight specs first; fall back to default double
    # buffering if this Pallas build rejects pipeline_mode=pl.Buffered(1).
    last_err = None
    for single_buffer_weights in (True, False):
        try:
            call = _build_adapter_call(B, S, E, num_heads, compute_dtype,
                                       approx_recip, single_buffer_weights)
            return jax.block_until_ready(call(*args))
        except Exception as e:   # noqa: BLE001 - retry once without Buffered(1)
            last_err = e
            if not single_buffer_weights:
                raise
    raise last_err


def init_params(key, embed_dim):
    E = embed_dim
    ks = jax.random.split(key, 4)
    bound = 1.0 / math.sqrt(E)
    wq = jax.random.uniform(ks[0], (E, E), jnp.float32, -bound, bound)
    wk = jax.random.uniform(ks[1], (E, E), jnp.float32, -bound, bound)
    wv = jax.random.uniform(ks[2], (E, E), jnp.float32, -bound, bound)
    wo = jax.random.uniform(ks[3], (E, E), jnp.float32, -bound, bound)
    return {
        "wq": wq, "wk": wk, "wv": wv, "wo": wo,
        "bq": jnp.zeros((1, E), jnp.float32),
        "bk": jnp.zeros((1, E), jnp.float32),
        "bv": jnp.zeros((1, E), jnp.float32),
        "bo": jnp.zeros((1, E), jnp.float32),
        "gamma": jnp.ones((1, E), jnp.float32),
        "beta": jnp.zeros((1, E), jnp.float32),
    }


def reference(x, params, num_heads):
    """Pure-JAX reference mirroring PyTorch MHA + residual + LayerNorm."""
    B, S, E = x.shape
    hd = E // num_heads
    q = x @ params["wq"].T + params["bq"]
    k = x @ params["wk"].T + params["bk"]
    v = x @ params["wv"].T + params["bv"]

    def split(t):
        return t.reshape(B, S, num_heads, hd).transpose(0, 2, 1, 3)

    qh, kh, vh = split(q), split(k), split(v)
    s = jnp.einsum("bhqd,bhkd->bhqk", qh, kh) / math.sqrt(hd)
    p = jax.nn.softmax(s, axis=-1)
    o = jnp.einsum("bhqk,bhkd->bhqd", p, vh)
    o = o.transpose(0, 2, 1, 3).reshape(B, S, E)
    attn_out = o @ params["wo"].T + params["bo"]
    y = attn_out + x
    mean = y.mean(-1, keepdims=True)
    var = ((y - mean) ** 2).mean(-1, keepdims=True)
    return (y - mean) / jnp.sqrt(var + 1e-5) * params["gamma"] + params["beta"]


if __name__ == "__main__":
    B, S, E, H = 2, 8, 32, 4
    key = jax.random.PRNGKey(0)
    kx, kp = jax.random.split(key)
    x = jax.random.normal(kx, (B, S, E), jnp.float32)
    params = init_params(kp, E)

    ref = reference(x, params, num_heads=H)

    # f32 path with exact reciprocal: tight correctness check against reference.
    out_f32 = context_adapter(x, params, num_heads=H,
                              compute_dtype=jnp.float32, approx_recip=False)
    err_f32 = float(jnp.max(jnp.abs(out_f32 - ref)))
    assert err_f32 < 2e-3, err_f32

    # bf16-operand + approx-reciprocal path (fast MXU path): loose sanity check.
    out_bf16 = context_adapter(x, params, num_heads=H,
                               compute_dtype=jnp.bfloat16, approx_recip=True)
    err_bf16 = float(jnp.max(jnp.abs(out_bf16 - ref)))
    assert err_bf16 < 0.15, err_bf16

    print("KERNEL_OK")
</pallas_src>

<mosaic_0001>
module attributes {stable_mosaic.version = 11 : i64} {
  func.func @kernel(%arg0: i32, %arg1: memref<1x8x32xf32, #tpu.memory_space<vmem>>, %arg2: memref<32x96xf32, #tpu.memory_space<vmem>>, %arg3: memref<32x32xf32, #tpu.memory_space<vmem>>, %arg4: memref<1x96xf32, #tpu.memory_space<vmem>>, %arg5: memref<1x32xf32, #tpu.memory_space<vmem>>, %arg6: memref<1x32xf32, #tpu.memory_space<vmem>>, %arg7: memref<1x32xf32, #tpu.memory_space<vmem>>, %arg8: memref<1x8x32xf32, #tpu.memory_space<vmem>>) attributes {dimension_semantics = [#tpu.dimension_semantics<parallel>], iteration_bounds = array<i64: 2>, scalar_prefetch = 0 : i64, scratch_operands = 0 : i64, tpu.core_type = #tpu.core_type<tc>, window_params = [{transform_indices = @transform_0, window_bounds = array<i64: 1, 8, 32>}, {pipeline_mode = #tpu.pipeline_mode<synchronous>, transform_indices = @transform_1, window_bounds = array<i64: 32, 96>}, {pipeline_mode = #tpu.pipeline_mode<synchronous>, transform_indices = @transform_2, window_bounds = array<i64: 32, 32>}, {pipeline_mode = #tpu.pipeline_mode<synchronous>, transform_indices = @transform_3, window_bounds = array<i64: 1, 96>}, {pipeline_mode = #tpu.pipeline_mode<synchronous>, transform_indices = @transform_4, window_bounds = array<i64: 1, 32>}, {pipeline_mode = #tpu.pipeline_mode<synchronous>, transform_indices = @transform_5, window_bounds = array<i64: 1, 32>}, {pipeline_mode = #tpu.pipeline_mode<synchronous>, transform_indices = @transform_6, window_bounds = array<i64: 1, 32>}, {transform_indices = @transform_7, window_bounds = array<i64: 1, 8, 32>}]} {
    %c0 = arith.constant 0 : index
    %c0_0 = arith.constant 0 : index
    %c0_1 = arith.constant 0 : index
    %0 = vector.load %arg1[%c0, %c0_0, %c0_1] : memref<1x8x32xf32, #tpu.memory_space<vmem>>, vector<1x8x32xf32>
    %1 = vector.shape_cast %0 : vector<1x8x32xf32> to vector<8x32xf32>
    %c0_2 = arith.constant 0 : index
    %c0_3 = arith.constant 0 : index
    %2 = vector.load %arg2[%c0_2, %c0_3] : memref<32x96xf32, #tpu.memory_space<vmem>>, vector<32x96xf32>
    %cst = arith.constant dense<0.000000e+00> : vector<8x96xf32>
    %3 = tpu.matmul %1, %2, %cst {dimension_numbers = #tpu.dot_dimension_numbers<[1], [0], [0], [1], [0, 0, 1, 1], [], []>} : vector<8x32xf32>, vector<32x96xf32>, vector<8x96xf32> -> vector<8x96xf32>
    %c0_4 = arith.constant 0 : index
    %c0_5 = arith.constant 0 : index
    %4 = vector.load %arg4[%c0_4, %c0_5] : memref<1x96xf32, #tpu.memory_space<vmem>>, vector<1x96xf32>
    %5 = vector.broadcast %4 : vector<1x96xf32> to vector<8x96xf32>
    %6 = arith.addf %3, %5 : vector<8x96xf32>
    %cst_6 = arith.constant 0.000000e+00 : f32
    %7 = vector.broadcast %cst_6 : f32 to vector<8x32xf32>
    %8 = vector.extract_strided_slice %6 {offsets = [0, 0], sizes = [8, 8], strides = [1, 1]} : vector<8x96xf32> to vector<8x8xf32>
    %9 = vector.extract_strided_slice %6 {offsets = [0, 32], sizes = [8, 8], strides = [1, 1]} : vector<8x96xf32> to vector<8x8xf32>
    %10 = vector.extract_strided_slice %6 {offsets = [0, 64], sizes = [8, 8], strides = [1, 1]} : vector<8x96xf32> to vector<8x8xf32>
    "tpu.trace_start"() <{level = 10 : i32, message = "qd,kd->qk"}> : () -> ()
    %cst_7 = arith.constant dense<0.000000e+00> : vector<8x8xf32>
    %11 = tpu.matmul %8, %9, %cst_7 {dimension_numbers = #tpu.dot_dimension_numbers<[1], [1], [0], [0], [0, 0, 1, 0], [], []>} : vector<8x8xf32>, vector<8x8xf32>, vector<8x8xf32> -> vector<8x8xf32>
    "tpu.trace_stop"() : () -> ()
    %cst_8 = arith.constant dense<0xFF800000> : vector<8xf32>
    %12 = vector.multi_reduction <maximumf>, %11, %cst_8 [1] : vector<8x8xf32> to vector<8xf32>
    %13 = vector.shape_cast %12 : vector<8xf32> to vector<8x1xf32>
    %14 = vector.broadcast %13 : vector<8x1xf32> to vector<8x8xf32>
    %15 = arith.subf %11, %14 : vector<8x8xf32>
    %16 = math.exp %15 : vector<8x8xf32>
    %cst_9 = arith.constant dense<0.000000e+00> : vector<8xf32>
    %17 = vector.multi_reduction <add>, %16, %cst_9 [1] : vector<8x8xf32> to vector<8xf32>
    %18 = vector.shape_cast %17 : vector<8xf32> to vector<8x1xf32>
    %cst_10 = arith.constant dense<0.000000e+00> : vector<8x8xf32>
    %19 = tpu.matmul %16, %10, %cst_10 {dimension_numbers = #tpu.dot_dimension_numbers<[1], [0], [0], [1], [0, 0, 1, 1], [], []>} : vector<8x8xf32>, vector<8x8xf32>, vector<8x8xf32> -> vector<8x8xf32>
    %20 = tpu.reciprocal %18 : vector<8x1xf32> -> vector<8x1xf32>
    %21 = vector.broadcast %20 : vector<8x1xf32> to vector<8x8xf32>
    %22 = arith.mulf %19, %21 : vector<8x8xf32>
    %c0_11 = arith.constant 0 : index
    %c0_12 = arith.constant 0 : index
    %23 = vector.load %arg3[%c0_11, %c0_12] : memref<32x32xf32, #tpu.memory_space<vmem>>, vector<8x32xf32>
    %cst_13 = arith.constant dense<0.000000e+00> : vector<8x32xf32>
    %24 = tpu.matmul %22, %23, %cst_13 {dimension_numbers = #tpu.dot_dimension_numbers<[1], [0], [0], [1], [0, 0, 1, 1], [], []>} : vector<8x8xf32>, vector<8x32xf32>, vector<8x32xf32> -> vector<8x32xf32>
    %25 = arith.addf %7, %24 : vector<8x32xf32>
    %26 = vector.extract_strided_slice %6 {offsets = [0, 8], sizes = [8, 8], strides = [1, 1]} : vector<8x96xf32> to vector<8x8xf32>
    %27 = vector.extract_strided_slice %6 {offsets = [0, 40], sizes = [8, 8], strides = [1, 1]} : vector<8x96xf32> to vector<8x8xf32>
    %28 = vector.extract_strided_slice %6 {offsets = [0, 72], sizes = [8, 8], strides = [1, 1]} : vector<8x96xf32> to vector<8x8xf32>
    "tpu.trace_start"() <{level = 10 : i32, message = "qd,kd->qk"}> : () -> ()
    %cst_14 = arith.constant dense<0.000000e+00> : vector<8x8xf32>
    %29 = tpu.matmul %26, %27, %cst_14 {dimension_numbers = #tpu.dot_dimension_numbers<[1], [1], [0], [0], [0, 0, 1, 0], [], []>} : vector<8x8xf32>, vector<8x8xf32>, vector<8x8xf32> -> vector<8x8xf32>
    "tpu.trace_stop"() : () -> ()
    %cst_15 = arith.constant dense<0xFF800000> : vector<8xf32>
    %30 = vector.multi_reduction <maximumf>, %29, %cst_15 [1] : vector<8x8xf32> to vector<8xf32>
    %31 = vector.shape_cast %30 : vector<8xf32> to vector<8x1xf32>
    %32 = vector.broadcast %31 : vector<8x1xf32> to vector<8x8xf32>
    %33 = arith.subf %29, %32 : vector<8x8xf32>
    %34 = math.exp %33 : vector<8x8xf32>
    %cst_16 = arith.constant dense<0.000000e+00> : vector<8xf32>
    %35 = vector.multi_reduction <add>, %34, %cst_16 [1] : vector<8x8xf32> to vector<8xf32>
    %36 = vector.shape_cast %35 : vector<8xf32> to vector<8x1xf32>
    %cst_17 = arith.constant dense<0.000000e+00> : vector<8x8xf32>
    %37 = tpu.matmul %34, %28, %cst_17 {dimension_numbers = #tpu.dot_dimension_numbers<[1], [0], [0], [1], [0, 0, 1, 1], [], []>} : vector<8x8xf32>, vector<8x8xf32>, vector<8x8xf32> -> vector<8x8xf32>
    %38 = tpu.reciprocal %36 : vector<8x1xf32> -> vector<8x1xf32>
    %39 = vector.broadcast %38 : vector<8x1xf32> to vector<8x8xf32>
    %40 = arith.mulf %37, %39 : vector<8x8xf32>
    %c8 = arith.constant 8 : index
    %c0_18 = arith.constant 0 : index
    %41 = vector.load %arg3[%c8, %c0_18] : memref<32x32xf32, #tpu.memory_space<vmem>>, vector<8x32xf32>
    %cst_19 = arith.constant dense<0.000000e+00> : vector<8x32xf32>
    %42 = tpu.matmul %40, %41, %cst_19 {dimension_numbers = #tpu.dot_dimension_numbers<[1], [0], [0], [1], [0, 0, 1, 1], [], []>} : vector<8x8xf32>, vector<8x32xf32>, vector<8x32xf32> -> vector<8x32xf32>
    %43 = arith.addf %25, %42 : vector<8x32xf32>
    %44 = vector.extract_strided_slice %6 {offsets = [0, 16], sizes = [8, 8], strides = [1, 1]} : vector<8x96xf32> to vector<8x8xf32>
    %45 = vector.extract_strided_slice %6 {offsets = [0, 48], sizes = [8, 8], strides = [1, 1]} : vector<8x96xf32> to vector<8x8xf32>
    %46 = vector.extract_strided_slice %6 {offsets = [0, 80], sizes = [8, 8], strides = [1, 1]} : vector<8x96xf32> to vector<8x8xf32>
    "tpu.trace_start"() <{level = 10 : i32, message = "qd,kd->qk"}> : () -> ()
    %cst_20 = arith.constant dense<0.000000e+00> : vector<8x8xf32>
    %47 = tpu.matmul %44, %45, %cst_20 {dimension_numbers = #tpu.dot_dimension_numbers<[1], [1], [0], [0], [0, 0, 1, 0], [], []>} : vector<8x8xf32>, vector<8x8xf32>, vector<8x8xf32> -> vector<8x8xf32>
    "tpu.trace_stop"() : () -> ()
    %cst_21 = arith.constant dense<0xFF800000> : vector<8xf32>
    %48 = vector.multi_reduction <maximumf>, %47, %cst_21 [1] : vector<8x8xf32> to vector<8xf32>
    %49 = vector.shape_cast %48 : vector<8xf32> to vector<8x1xf32>
    %50 = vector.broadcast %49 : vector<8x1xf32> to vector<8x8xf32>
    %51 = arith.subf %47, %50 : vector<8x8xf32>
    %52 = math.exp %51 : vector<8x8xf32>
    %cst_22 = arith.constant dense<0.000000e+00> : vector<8xf32>
    %53 = vector.multi_reduction <add>, %52, %cst_22 [1] : vector<8x8xf32> to vector<8xf32>
    %54 = vector.shape_cast %53 : vector<8xf32> to vector<8x1xf32>
    %cst_23 = arith.constant dense<0.000000e+00> : vector<8x8xf32>
    %55 = tpu.matmul %52, %46, %cst_23 {dimension_numbers = #tpu.dot_dimension_numbers<[1], [0], [0], [1], [0, 0, 1, 1], [], []>} : vector<8x8xf32>, vector<8x8xf32>, vector<8x8xf32> -> vector<8x8xf32>
    %56 = tpu.reciprocal %54 : vector<8x1xf32> -> vector<8x1xf32>
    %57 = vector.broadcast %56 : vector<8x1xf32> to vector<8x8xf32>
    %58 = arith.mulf %55, %57 : vector<8x8xf32>
    %c16 = arith.constant 16 : index
    %c0_24 = arith.constant 0 : index
    %59 = vector.load %arg3[%c16, %c0_24] : memref<32x32xf32, #tpu.memory_space<vmem>>, vector<8x32xf32>
    %cst_25 = arith.constant dense<0.000000e+00> : vector<8x32xf32>
    %60 = tpu.matmul %58, %59, %cst_25 {dimension_numbers = #tpu.dot_dimension_numbers<[1], [0], [0], [1], [0, 0, 1, 1], [], []>} : vector<8x8xf32>, vector<8x32xf32>, vector<8x32xf32> -> vector<8x32xf32>
    %61 = arith.addf %43, %60 : vector<8x32xf32>
    %62 = vector.extract_strided_slice %6 {offsets = [0, 24], sizes = [8, 8], strides = [1, 1]} : vector<8x96xf32> to vector<8x8xf32>
    %63 = vector.extract_strided_slice %6 {offsets = [0, 56], sizes = [8, 8], strides = [1, 1]} : vector<8x96xf32> to vector<8x8xf32>
    %64 = vector.extract_strided_slice %6 {offsets = [0, 88], sizes = [8, 8], strides = [1, 1]} : vector<8x96xf32> to vector<8x8xf32>
    "tpu.trace_start"() <{level = 10 : i32, message = "qd,kd->qk"}> : () -> ()
    %cst_26 = arith.constant dense<0.000000e+00> : vector<8x8xf32>
    %65 = tpu.matmul %62, %63, %cst_26 {dimension_numbers = #tpu.dot_dimension_numbers<[1], [1], [0], [0], [0, 0, 1, 0], [], []>} : vector<8x8xf32>, vector<8x8xf32>, vector<8x8xf32> -> vector<8x8xf32>
    "tpu.trace_stop"() : () -> ()
    %cst_27 = arith.constant dense<0xFF800000> : vector<8xf32>
    %66 = vector.multi_reduction <maximumf>, %65, %cst_27 [1] : vector<8x8xf32> to vector<8xf32>
    %67 = vector.shape_cast %66 : vector<8xf32> to vector<8x1xf32>
    %68 = vector.broadcast %67 : vector<8x1xf32> to vector<8x8xf32>
    %69 = arith.subf %65, %68 : vector<8x8xf32>
    %70 = math.exp %69 : vector<8x8xf32>
    %cst_28 = arith.constant dense<0.000000e+00> : vector<8xf32>
    %71 = vector.multi_reduction <add>, %70, %cst_28 [1] : vector<8x8xf32> to vector<8xf32>
    %72 = vector.shape_cast %71 : vector<8xf32> to vector<8x1xf32>
    %cst_29 = arith.constant dense<0.000000e+00> : vector<8x8xf32>
    %73 = tpu.matmul %70, %64, %cst_29 {dimension_numbers = #tpu.dot_dimension_numbers<[1], [0], [0], [1], [0, 0, 1, 1], [], []>} : vector<8x8xf32>, vector<8x8xf32>, vector<8x8xf32> -> vector<8x8xf32>
    %74 = tpu.reciprocal %72 : vector<8x1xf32> -> vector<8x1xf32>
    %75 = vector.broadcast %74 : vector<8x1xf32> to vector<8x8xf32>
    %76 = arith.mulf %73, %75 : vector<8x8xf32>
    %c24 = arith.constant 24 : index
    %c0_30 = arith.constant 0 : index
    %77 = vector.load %arg3[%c24, %c0_30] : memref<32x32xf32, #tpu.memory_space<vmem>>, vector<8x32xf32>
    %cst_31 = arith.constant dense<0.000000e+00> : vector<8x32xf32>
    %78 = tpu.matmul %76, %77, %cst_31 {dimension_numbers = #tpu.dot_dimension_numbers<[1], [0], [0], [1], [0, 0, 1, 1], [], []>} : vector<8x8xf32>, vector<8x32xf32>, vector<8x32xf32> -> vector<8x32xf32>
    %79 = arith.addf %61, %78 : vector<8x32xf32>
    %c0_32 = arith.constant 0 : index
    %c0_33 = arith.constant 0 : index
    %80 = vector.load %arg5[%c0_32, %c0_33] : memref<1x32xf32, #tpu.memory_space<vmem>>, vector<1x32xf32>
    %81 = vector.broadcast %80 : vector<1x32xf32> to vector<8x32xf32>
    %82 = arith.addf %79, %81 : vector<8x32xf32>
    %83 = arith.addf %82, %1 : vector<8x32xf32>
    %cst_34 = arith.constant dense<0.000000e+00> : vector<8xf32>
    %84 = vector.multi_reduction <add>, %83, %cst_34 [1] : vector<8x32xf32> to vector<8xf32>
    %85 = vector.shape_cast %84 : vector<8xf32> to vector<8x1xf32>
    %cst_35 = arith.constant 3.200000e+01 : f32
    %86 = vector.broadcast %cst_35 : f32 to vector<8x1xf32>
    %87 = arith.divf %85, %86 : vector<8x1xf32>
    %88 = vector.broadcast %87 : vector<8x1xf32> to vector<8x32xf32>
    %89 = arith.subf %83, %88 : vector<8x32xf32>
    %90 = arith.mulf %89, %89 : vector<8x32xf32>
    %cst_36 = arith.constant dense<0.000000e+00> : vector<8xf32>
    %91 = vector.multi_reduction <add>, %90, %cst_36 [1] : vector<8x32xf32> to vector<8xf32>
    %92 = vector.shape_cast %91 : vector<8xf32> to vector<8x1xf32>
    %cst_37 = arith.constant 3.200000e+01 : f32
    %93 = vector.broadcast %cst_37 : f32 to vector<8x1xf32>
    %94 = arith.divf %92, %93 : vector<8x1xf32>
    %cst_38 = arith.constant 9.99999974E-6 : f32
    %95 = vector.broadcast %cst_38 : f32 to vector<8x1xf32>
    %96 = arith.addf %94, %95 : vector<8x1xf32>
    %97 = math.rsqrt %96 : vector<8x1xf32>
    %98 = vector.broadcast %97 : vector<8x1xf32> to vector<8x32xf32>
    %99 = arith.mulf %89, %98 : vector<8x32xf32>
    %c0_39 = arith.constant 0 : index
    %c0_40 = arith.constant 0 : index
    %100 = vector.load %arg6[%c0_39, %c0_40] : memref<1x32xf32, #tpu.memory_space<vmem>>, vector<1x32xf32>
    %101 = vector.broadcast %100 : vector<1x32xf32> to vector<8x32xf32>
    %102 = arith.mulf %99, %101 : vector<8x32xf32>
    %c0_41 = arith.constant 0 : index
    %c0_42 = arith.constant 0 : index
    %103 = vector.load %arg7[%c0_41, %c0_42] : memref<1x32xf32, #tpu.memory_space<vmem>>, vector<1x32xf32>
    %104 = vector.broadcast %103 : vector<1x32xf32> to vector<8x32xf32>
    %105 = arith.addf %102, %104 : vector<8x32xf32>
    %c0_43 = arith.constant 0 : index
    %c0_44 = arith.constant 0 : index
    %c0_45 = arith.constant 0 : index
    %106 = vector.load %arg8[%c0_43, %c0_44, %c0_45] : memref<1x8x32xf32, #tpu.memory_space<vmem>>, vector<1x8x32xf32>
    %107 = vector.shape_cast %106 : vector<1x8x32xf32> to vector<8x32xf32>
    %108 = vector.shape_cast %105 : vector<8x32xf32> to vector<1x8x32xf32>
    tpu.vector_store %arg8[%c0_43, %c0_44, %c0_45], %108 {strides = array<i32>} : memref<1x8x32xf32, #tpu.memory_space<vmem>>, vector<1x8x32xf32>,
    return
  }
  func.func @transform_0(%arg0: i32) -> (i32, i32, i32) {
    %c0_i32 = arith.constant 0 : i32
    %c0_i32_0 = arith.constant 0 : i32
    %c0_i32_1 = arith.constant 0 : i32
    return %arg0, %c0_i32, %c0_i32_0 : i32, i32, i32
  }
  func.func @transform_1(%arg0: i32) -> (i32, i32) {
    %c0_i32 = arith.constant 0 : i32
    %c0_i32_0 = arith.constant 0 : i32
    %c0_i32_1 = arith.constant 0 : i32
    return %c0_i32, %c0_i32_0 : i32, i32
  }
  func.func @transform_2(%arg0: i32) -> (i32, i32) {
    %c0_i32 = arith.constant 0 : i32
    %c0_i32_0 = arith.constant 0 : i32
    %c0_i32_1 = arith.constant 0 : i32
    return %c0_i32, %c0_i32_0 : i32, i32
  }
  func.func @transform_3(%arg0: i32) -> (i32, i32) {
    %c0_i32 = arith.constant 0 : i32
    %c0_i32_0 = arith.constant 0 : i32
    %c0_i32_1 = arith.constant 0 : i32
    return %c0_i32, %c0_i32_0 : i32, i32
  }
  func.func @transform_4(%arg0: i32) -> (i32, i32) {
    %c0_i32 = arith.constant 0 : i32
    %c0_i32_0 = arith.constant 0 : i32
    %c0_i32_1 = arith.constant 0 : i32
    return %c0_i32, %c0_i32_0 : i32, i32
  }
  func.func @transform_5(%arg0: i32) -> (i32, i32) {
    %c0_i32 = arith.constant 0 : i32
    %c0_i32_0 = arith.constant 0 : i32
    %c0_i32_1 = arith.constant 0 : i32
    return %c0_i32, %c0_i32_0 : i32, i32
  }
  func.func @transform_6(%arg0: i32) -> (i32, i32) {
    %c0_i32 = arith.constant 0 : i32
    %c0_i32_0 = arith.constant 0 : i32
    %c0_i32_1 = arith.constant 0 : i32
    return %c0_i32, %c0_i32_0 : i32, i32
  }
  func.func @transform_7(%arg0: i32) -> (i32, i32, i32) {
    %c0_i32 = arith.constant 0 : i32
    %c0_i32_0 = arith.constant 0 : i32
    %c0_i32_1 = arith.constant 0 : i32
    return %arg0, %c0_i32, %c0_i32_0 : i32, i32, i32
  }
}

module attributes {stable_mosaic.version = 11 : i64} {
  func.func @kernel(%arg0: i32, %arg1: memref<1x8x32xf32, #tpu.memory_space<vmem>>, %arg2: memref<32x96xf32, #tpu.memory_space<vmem>>, %arg3: memref<32x32xf32, #tpu.memory_space<vmem>>, %arg4: memref<1x96xf32, #tpu.memory_space<vmem>>, %arg5: memref<1x32xf32, #tpu.memory_space<vmem>>, %arg6: memref<1x32xf32, #tpu.memory_space<vmem>>, %arg7: memref<1x32xf32, #tpu.memory_space<vmem>>, %arg8: memref<1x8x32xf32, #tpu.memory_space<vmem>>) attributes {dimension_semantics = [#tpu.dimension_semantics<parallel>], iteration_bounds = array<i64: 2>, scalar_prefetch = 0 : i64, scratch_operands = 0 : i64, tpu.core_type = #tpu.core_type<tc>, window_params = [{transform_indices = @transform_0, window_bounds = array<i64: 1, 8, 32>}, {pipeline_mode = #tpu.pipeline_mode<synchronous>, transform_indices = @transform_1, window_bounds = array<i64: 32, 96>}, {pipeline_mode = #tpu.pipeline_mode<synchronous>, transform_indices = @transform_2, window_bounds = array<i64: 32, 32>}, {pipeline_mode = #tpu.pipeline_mode<synchronous>, transform_indices = @transform_3, window_bounds = array<i64: 1, 96>}, {pipeline_mode = #tpu.pipeline_mode<synchronous>, transform_indices = @transform_4, window_bounds = array<i64: 1, 32>}, {pipeline_mode = #tpu.pipeline_mode<synchronous>, transform_indices = @transform_5, window_bounds = array<i64: 1, 32>}, {pipeline_mode = #tpu.pipeline_mode<synchronous>, transform_indices = @transform_6, window_bounds = array<i64: 1, 32>}, {transform_indices = @transform_7, window_bounds = array<i64: 1, 8, 32>}]} {
    %c0 = arith.constant 0 : index
    %c0_0 = arith.constant 0 : index
    %c0_1 = arith.constant 0 : index
    %0 = vector.load %arg1[%c0, %c0_0, %c0_1] : memref<1x8x32xf32, #tpu.memory_space<vmem>>, vector<1x8x32xf32>
    %1 = vector.shape_cast %0 : vector<1x8x32xf32> to vector<8x32xf32>
    %c0_2 = arith.constant 0 : index
    %c0_3 = arith.constant 0 : index
    %2 = vector.load %arg2[%c0_2, %c0_3] : memref<32x96xf32, #tpu.memory_space<vmem>>, vector<32x96xf32>
    %cst = arith.constant dense<0.000000e+00> : vector<8x96xf32>
    %3 = tpu.matmul %1, %2, %cst {dimension_numbers = #tpu.dot_dimension_numbers<[1], [0], [0], [1], [0, 0, 1, 1], [], []>} : vector<8x32xf32>, vector<32x96xf32>, vector<8x96xf32> -> vector<8x96xf32>
    %c0_4 = arith.constant 0 : index
    %c0_5 = arith.constant 0 : index
    %4 = vector.load %arg4[%c0_4, %c0_5] : memref<1x96xf32, #tpu.memory_space<vmem>>, vector<1x96xf32>
    %5 = vector.broadcast %4 : vector<1x96xf32> to vector<8x96xf32>
    %6 = arith.addf %3, %5 : vector<8x96xf32>
    %cst_6 = arith.constant 0.000000e+00 : f32
    %7 = vector.broadcast %cst_6 : f32 to vector<8x32xf32>
    %8 = vector.extract_strided_slice %6 {offsets = [0, 0], sizes = [8, 8], strides = [1, 1]} : vector<8x96xf32> to vector<8x8xf32>
    %9 = vector.extract_strided_slice %6 {offsets = [0, 32], sizes = [8, 8], strides = [1, 1]} : vector<8x96xf32> to vector<8x8xf32>
    %10 = vector.extract_strided_slice %6 {offsets = [0, 64], sizes = [8, 8], strides = [1, 1]} : vector<8x96xf32> to vector<8x8xf32>
    "tpu.trace_start"() <{level = 10 : i32, message = "qd,kd->qk"}> : () -> ()
    %cst_7 = arith.constant dense<0.000000e+00> : vector<8x8xf32>
    %11 = tpu.matmul %8, %9, %cst_7 {dimension_numbers = #tpu.dot_dimension_numbers<[1], [1], [0], [0], [0, 0, 1, 0], [], []>} : vector<8x8xf32>, vector<8x8xf32>, vector<8x8xf32> -> vector<8x8xf32>
    "tpu.trace_stop"() : () -> ()
    %cst_8 = arith.constant dense<0xFF800000> : vector<8xf32>
    %12 = vector.multi_reduction <maximumf>, %11, %cst_8 [1] : vector<8x8xf32> to vector<8xf32>
    %13 = vector.shape_cast %12 : vector<8xf32> to vector<8x1xf32>
    %14 = vector.broadcast %13 : vector<8x1xf32> to vector<8x8xf32>
    %15 = arith.subf %11, %14 : vector<8x8xf32>
    %16 = math.exp %15 : vector<8x8xf32>
    %cst_9 = arith.constant dense<0.000000e+00> : vector<8xf32>
    %17 = vector.multi_reduction <add>, %16, %cst_9 [1] : vector<8x8xf32> to vector<8xf32>
    %18 = vector.shape_cast %17 : vector<8xf32> to vector<8x1xf32>
    %cst_10 = arith.constant dense<0.000000e+00> : vector<8x8xf32>
    %19 = tpu.matmul %16, %10, %cst_10 {dimension_numbers = #tpu.dot_dimension_numbers<[1], [0], [0], [1], [0, 0, 1, 1], [], []>} : vector<8x8xf32>, vector<8x8xf32>, vector<8x8xf32> -> vector<8x8xf32>
    %20 = tpu.reciprocal %18 : vector<8x1xf32> -> vector<8x1xf32>
    %21 = vector.broadcast %20 : vector<8x1xf32> to vector<8x8xf32>
    %22 = arith.mulf %19, %21 : vector<8x8xf32>
    %c0_11 = arith.constant 0 : index
    %c0_12 = arith.constant 0 : index
    %23 = vector.load %arg3[%c0_11, %c0_12] : memref<32x32xf32, #tpu.memory_space<vmem>>, vector<8x32xf32>
    %cst_13 = arith.constant dense<0.000000e+00> : vector<8x32xf32>
    %24 = tpu.matmul %22, %23, %cst_13 {dimension_numbers = #tpu.dot_dimension_numbers<[1], [0], [0], [1], [0, 0, 1, 1], [], []>} : vector<8x8xf32>, vector<8x32xf32>, vector<8x32xf32> -> vector<8x32xf32>
    %25 = arith.addf %7, %24 : vector<8x32xf32>
    %26 = vector.extract_strided_slice %6 {offsets = [0, 8], sizes = [8, 8], strides = [1, 1]} : vector<8x96xf32> to vector<8x8xf32>
    %27 = vector.extract_strided_slice %6 {offsets = [0, 40], sizes = [8, 8], strides = [1, 1]} : vector<8x96xf32> to vector<8x8xf32>
    %28 = vector.extract_strided_slice %6 {offsets = [0, 72], sizes = [8, 8], strides = [1, 1]} : vector<8x96xf32> to vector<8x8xf32>
    "tpu.trace_start"() <{level = 10 : i32, message = "qd,kd->qk"}> : () -> ()
    %cst_14 = arith.constant dense<0.000000e+00> : vector<8x8xf32>
    %29 = tpu.matmul %26, %27, %cst_14 {dimension_numbers = #tpu.dot_dimension_numbers<[1], [1], [0], [0], [0, 0, 1, 0], [], []>} : vector<8x8xf32>, vector<8x8xf32>, vector<8x8xf32> -> vector<8x8xf32>
    "tpu.trace_stop"() : () -> ()
    %cst_15 = arith.constant dense<0xFF800000> : vector<8xf32>
    %30 = vector.multi_reduction <maximumf>, %29, %cst_15 [1] : vector<8x8xf32> to vector<8xf32>
    %31 = vector.shape_cast %30 : vector<8xf32> to vector<8x1xf32>
    %32 = vector.broadcast %31 : vector<8x1xf32> to vector<8x8xf32>
    %33 = arith.subf %29, %32 : vector<8x8xf32>
    %34 = math.exp %33 : vector<8x8xf32>
    %cst_16 = arith.constant dense<0.000000e+00> : vector<8xf32>
    %35 = vector.multi_reduction <add>, %34, %cst_16 [1] : vector<8x8xf32> to vector<8xf32>
    %36 = vector.shape_cast %35 : vector<8xf32> to vector<8x1xf32>
    %cst_17 = arith.constant dense<0.000000e+00> : vector<8x8xf32>
    %37 = tpu.matmul %34, %28, %cst_17 {dimension_numbers = #tpu.dot_dimension_numbers<[1], [0], [0], [1], [0, 0, 1, 1], [], []>} : vector<8x8xf32>, vector<8x8xf32>, vector<8x8xf32> -> vector<8x8xf32>
    %38 = tpu.reciprocal %36 : vector<8x1xf32> -> vector<8x1xf32>
    %39 = vector.broadcast %38 : vector<8x1xf32> to vector<8x8xf32>
    %40 = arith.mulf %37, %39 : vector<8x8xf32>
    %c8 = arith.constant 8 : index
    %c0_18 = arith.constant 0 : index
    %41 = vector.load %arg3[%c8, %c0_18] : memref<32x32xf32, #tpu.memory_space<vmem>>, vector<8x32xf32>
    %cst_19 = arith.constant dense<0.000000e+00> : vector<8x32xf32>
    %42 = tpu.matmul %40, %41, %cst_19 {dimension_numbers = #tpu.dot_dimension_numbers<[1], [0], [0], [1], [0, 0, 1, 1], [], []>} : vector<8x8xf32>, vector<8x32xf32>, vector<8x32xf32> -> vector<8x32xf32>
    %43 = arith.addf %25, %42 : vector<8x32xf32>
    %44 = vector.extract_strided_slice %6 {offsets = [0, 16], sizes = [8, 8], strides = [1, 1]} : vector<8x96xf32> to vector<8x8xf32>
    %45 = vector.extract_strided_slice %6 {offsets = [0, 48], sizes = [8, 8], strides = [1, 1]} : vector<8x96xf32> to vector<8x8xf32>
    %46 = vector.extract_strided_slice %6 {offsets = [0, 80], sizes = [8, 8], strides = [1, 1]} : vector<8x96xf32> to vector<8x8xf32>
    "tpu.trace_start"() <{level = 10 : i32, message = "qd,kd->qk"}> : () -> ()
    %cst_20 = arith.constant dense<0.000000e+00> : vector<8x8xf32>
    %47 = tpu.matmul %44, %45, %cst_20 {dimension_numbers = #tpu.dot_dimension_numbers<[1], [1], [0], [0], [0, 0, 1, 0], [], []>} : vector<8x8xf32>, vector<8x8xf32>, vector<8x8xf32> -> vector<8x8xf32>
    "tpu.trace_stop"() : () -> ()
    %cst_21 = arith.constant dense<0xFF800000> : vector<8xf32>
    %48 = vector.multi_reduction <maximumf>, %47, %cst_21 [1] : vector<8x8xf32> to vector<8xf32>
    %49 = vector.shape_cast %48 : vector<8xf32> to vector<8x1xf32>
    %50 = vector.broadcast %49 : vector<8x1xf32> to vector<8x8xf32>
    %51 = arith.subf %47, %50 : vector<8x8xf32>
    %52 = math.exp %51 : vector<8x8xf32>
    %cst_22 = arith.constant dense<0.000000e+00> : vector<8xf32>
    %53 = vector.multi_reduction <add>, %52, %cst_22 [1] : vector<8x8xf32> to vector<8xf32>
    %54 = vector.shape_cast %53 : vector<8xf32> to vector<8x1xf32>
    %cst_23 = arith.constant dense<0.000000e+00> : vector<8x8xf32>
    %55 = tpu.matmul %52, %46, %cst_23 {dimension_numbers = #tpu.dot_dimension_numbers<[1], [0], [0], [1], [0, 0, 1, 1], [], []>} : vector<8x8xf32>, vector<8x8xf32>, vector<8x8xf32> -> vector<8x8xf32>
    %56 = tpu.reciprocal %54 : vector<8x1xf32> -> vector<8x1xf32>
    %57 = vector.broadcast %56 : vector<8x1xf32> to vector<8x8xf32>
    %58 = arith.mulf %55, %57 : vector<8x8xf32>
    %c16 = arith.constant 16 : index
    %c0_24 = arith.constant 0 : index
    %59 = vector.load %arg3[%c16, %c0_24] : memref<32x32xf32, #tpu.memory_space<vmem>>, vector<8x32xf32>
    %cst_25 = arith.constant dense<0.000000e+00> : vector<8x32xf32>
    %60 = tpu.matmul %58, %59, %cst_25 {dimension_numbers = #tpu.dot_dimension_numbers<[1], [0], [0], [1], [0, 0, 1, 1], [], []>} : vector<8x8xf32>, vector<8x32xf32>, vector<8x32xf32> -> vector<8x32xf32>
    %61 = arith.addf %43, %60 : vector<8x32xf32>
    %62 = vector.extract_strided_slice %6 {offsets = [0, 24], sizes = [8, 8], strides = [1, 1]} : vector<8x96xf32> to vector<8x8xf32>
    %63 = vector.extract_strided_slice %6 {offsets = [0, 56], sizes = [8, 8], strides = [1, 1]} : vector<8x96xf32> to vector<8x8xf32>
    %64 = vector.extract_strided_slice %6 {offsets = [0, 88], sizes = [8, 8], strides = [1, 1]} : vector<8x96xf32> to vector<8x8xf32>
    "tpu.trace_start"() <{level = 10 : i32, message = "qd,kd->qk"}> : () -> ()
    %cst_26 = arith.constant dense<0.000000e+00> : vector<8x8xf32>
    %65 = tpu.matmul %62, %63, %cst_26 {dimension_numbers = #tpu.dot_dimension_numbers<[1], [1], [0], [0], [0, 0, 1, 0], [], []>} : vector<8x8xf32>, vector<8x8xf32>, vector<8x8xf32> -> vector<8x8xf32>
    "tpu.trace_stop"() : () -> ()
    %cst_27 = arith.constant dense<0xFF800000> : vector<8xf32>
    %66 = vector.multi_reduction <maximumf>, %65, %cst_27 [1] : vector<8x8xf32> to vector<8xf32>
    %67 = vector.shape_cast %66 : vector<8xf32> to vector<8x1xf32>
    %68 = vector.broadcast %67 : vector<8x1xf32> to vector<8x8xf32>
    %69 = arith.subf %65, %68 : vector<8x8xf32>
    %70 = math.exp %69 : vector<8x8xf32>
    %cst_28 = arith.constant dense<0.000000e+00> : vector<8xf32>
    %71 = vector.multi_reduction <add>, %70, %cst_28 [1] : vector<8x8xf32> to vector<8xf32>
    %72 = vector.shape_cast %71 : vector<8xf32> to vector<8x1xf32>
    %cst_29 = arith.constant dense<0.000000e+00> : vector<8x8xf32>
    %73 = tpu.matmul %70, %64, %cst_29 {dimension_numbers = #tpu.dot_dimension_numbers<[1], [0], [0], [1], [0, 0, 1, 1], [], []>} : vector<8x8xf32>, vector<8x8xf32>, vector<8x8xf32> -> vector<8x8xf32>
    %74 = tpu.reciprocal %72 : vector<8x1xf32> -> vector<8x1xf32>
    %75 = vector.broadcast %74 : vector<8x1xf32> to vector<8x8xf32>
    %76 = arith.mulf %73, %75 : vector<8x8xf32>
    %c24 = arith.constant 24 : index
    %c0_30 = arith.constant 0 : index
    %77 = vector.load %arg3[%c24, %c0_30] : memref<32x32xf32, #tpu.memory_space<vmem>>, vector<8x32xf32>
    %cst_31 = arith.constant dense<0.000000e+00> : vector<8x32xf32>
    %78 = tpu.matmul %76, %77, %cst_31 {dimension_numbers = #tpu.dot_dimension_numbers<[1], [0], [0], [1], [0, 0, 1, 1], [], []>} : vector<8x8xf32>, vector<8x32xf32>, vector<8x32xf32> -> vector<8x32xf32>
    %79 = arith.addf %61, %78 : vector<8x32xf32>
    %c0_32 = arith.constant 0 : index
    %c0_33 = arith.constant 0 : index
    %80 = vector.load %arg5[%c0_32, %c0_33] : memref<1x32xf32, #tpu.memory_space<vmem>>, vector<1x32xf32>
    %81 = vector.broadcast %80 : vector<1x32xf32> to vector<8x32xf32>
    %82 = arith.addf %79, %81 : vector<8x32xf32>
    %83 = arith.addf %82, %1 : vector<8x32xf32>
    %cst_34 = arith.constant dense<0.000000e+00> : vector<8xf32>
    %84 = vector.multi_reduction <add>, %83, %cst_34 [1] : vector<8x32xf32> to vector<8xf32>
    %85 = vector.shape_cast %84 : vector<8xf32> to vector<8x1xf32>
    %cst_35 = arith.constant 3.200000e+01 : f32
    %86 = vector.broadcast %cst_35 : f32 to vector<8x1xf32>
    %87 = arith.divf %85, %86 : vector<8x1xf32>
    %88 = vector.broadcast %87 : vector<8x1xf32> to vector<8x32xf32>
    %89 = arith.subf %83, %88 : vector<8x32xf32>
    %90 = arith.mulf %89, %89 : vector<8x32xf32>
    %cst_36 = arith.constant dense<0.000000e+00> : vector<8xf32>
    %91 = vector.multi_reduction <add>, %90, %cst_36 [1] : vector<8x32xf32> to vector<8xf32>
    %92 = vector.shape_cast %91 : vector<8xf32> to vector<8x1xf32>
    %cst_37 = arith.constant 3.200000e+01 : f32
    %93 = vector.broadcast %cst_37 : f32 to vector<8x1xf32>
    %94 = arith.divf %92, %93 : vector<8x1xf32>
    %cst_38 = arith.constant 9.99999974E-6 : f32
    %95 = vector.broadcast %cst_38 : f32 to vector<8x1xf32>
    %96 = arith.addf %94, %95 : vector<8x1xf32>
    %97 = math.rsqrt %96 : vector<8x1xf32>
    %98 = vector.broadcast %97 : vector<8x1xf32> to vector<8x32xf32>
    %99 = arith.mulf %89, %98 : vector<8x32xf32>
    %c0_39 = arith.constant 0 : index
    %c0_40 = arith.constant 0 : index
    %100 = vector.load %arg6[%c0_39, %c0_40] : memref<1x32xf32, #tpu.memory_space<vmem>>, vector<1x32xf32>
    %101 = vector.broadcast %100 : vector<1x32xf32> to vector<8x32xf32>
    %102 = arith.mulf %99, %101 : vector<8x32xf32>
    %c0_41 = arith.constant 0 : index
    %c0_42 = arith.constant 0 : index
    %103 = vector.load %arg7[%c0_41, %c0_42] : memref<1x32xf32, #tpu.memory_space<vmem>>, vector<1x32xf32>
    %104 = vector.broadcast %103 : vector<1x32xf32> to vector<8x32xf32>
    %105 = arith.addf %102, %104 : vector<8x32xf32>
    %c0_43 = arith.constant 0 : index
    %c0_44 = arith.constant 0 : index
    %c0_45 = arith.constant 0 : index
    %106 = vector.load %arg8[%c0_43, %c0_44, %c0_45] : memref<1x8x32xf32, #tpu.memory_space<vmem>>, vector<1x8x32xf32>
    %107 = vector.shape_cast %106 : vector<1x8x32xf32> to vector<8x32xf32>
    %108 = vector.shape_cast %105 : vector<8x32xf32> to vector<1x8x32xf32>
    tpu.vector_store %arg8[%c0_43, %c0_44, %c0_45], %108 {strides = array<i32>} : memref<1x8x32xf32, #tpu.memory_space<vmem>>, vector<1x8x32xf32>,
    return
  }
  func.func @transform_0(%arg0: i32) -> (i32, i32, i32) {
    %c0_i32 = arith.constant 0 : i32
    %c0_i32_0 = arith.constant 0 : i32
    %c0_i32_1 = arith.constant 0 : i32
    return %arg0, %c0_i32, %c0_i32_0 : i32, i32, i32
  }
  func.func @transform_1(%arg0: i32) -> (i32, i32) {
    %c0_i32 = arith.constant 0 : i32
    %c0_i32_0 = arith.constant 0 : i32
    %c0_i32_1 = arith.constant 0 : i32
    return %c0_i32, %c0_i32_0 : i32, i32
  }
  func.func @transform_2(%arg0: i32) -> (i32, i32) {
    %c0_i32 = arith.constant 0 : i32
    %c0_i32_0 = arith.constant 0 : i32
    %c0_i32_1 = arith.constant 0 : i32
    return %c0_i32, %c0_i32_0 : i32, i32
  }
  func.func @transform_3(%arg0: i32) -> (i32, i32) {
    %c0_i32 = arith.constant 0 : i32
    %c0_i32_0 = arith.constant 0 : i32
    %c0_i32_1 = arith.constant 0 : i32
    return %c0_i32, %c0_i32_0 : i32, i32
  }
  func.func @transform_4(%arg0: i32) -> (i32, i32) {
    %c0_i32 = arith.constant 0 : i32
    %c0_i32_0 = arith.constant 0 : i32
    %c0_i32_1 = arith.constant 0 : i32
    return %c0_i32, %c0_i32_0 : i32, i32
  }
  func.func @transform_5(%arg0: i32) -> (i32, i32) {
    %c0_i32 = arith.constant 0 : i32
    %c0_i32_0 = arith.constant 0 : i32
    %c0_i32_1 = arith.constant 0 : i32
    return %c0_i32, %c0_i32_0 : i32, i32
  }
  func.func @transform_6(%arg0: i32) -> (i32, i32) {
    %c0_i32 = arith.constant 0 : i32
    %c0_i32_0 = arith.constant 0 : i32
    %c0_i32_1 = arith.constant 0 : i32
    return %c0_i32, %c0_i32_0 : i32, i32
  }
  func.func @transform_7(%arg0: i32) -> (i32, i32, i32) {
    %c0_i32 = arith.constant 0 : i32
    %c0_i32_0 = arith.constant 0 : i32
    %c0_i32_1 = arith.constant 0 : i32
    return %arg0, %c0_i32, %c0_i32_0 : i32, i32, i32
  }
}

</mosaic_0001>

<bundles_post_ra>
// kernel: tpu_custom_call.1
= control target key start
LH: loop header
LB: loop body
LE: loop exit
PB: predicated region body
PF: predicated region fallthrough
CT: control target
= control target key end

     0   :  { %s2225_s0 = inlined_call_operand.hbm [shape: f32[2,8,32], index: 0, kind: input, shape index: {}]   ;;  %s2226_s1 = inlined_call_operand.hbm [shape: f32[32,96], index: 1, kind: input, shape index: {}]   ;;  %s2227_s2 = inlined_call_operand.hbm [shape: f32[32,32], index: 2, kind: input, shape index: {}]   ;;  %s2228_s3 = inlined_call_operand.vmem [shape: f32[1,96], index: 3, kind: input, shape index: {}]   ;;  %s2229_s4 = inlined_call_operand.vmem [shape: f32[1,32], index: 4, kind: input, shape index: {}]   ;;  %s2230_s5 = inlined_call_operand.vmem [shape: f32[1,32], index: 5, kind: input, shape index: {}]   ;;  %s2231_s6 = inlined_call_operand.vmem [shape: f32[1,32], index: 6, kind: input, shape index: {}]   ;;  %s2232_s7 = inlined_call_operand.hbm [shape: f32[2,8,32], index: 7, kind: output, shape index: {}]  }
   0x1   :  { %2237 = sst [smem:[#allocation12_spill]] %s2226_s1 }
   0x2   :  { %2238 = sst [smem:[#allocation13_spill]] %s2227_s2 }
   0x3   :  { %12 = vsyncpa [#allocation3], 0 }
   0x4   :  { %14 = vsyncpa [#allocation3 + $0x1], 0 }
   0x5   :  { %15 = vsyncpa [#allocation6], 0 }
   0x6   :  { %16 = vsyncpa [#allocation4], 0 }
   0x7   :  { %18 = vsyncpa [#allocation4 + $0x1], 0  ;;  %s1956_s24 = smov 0   ;;  %s1958_s25 = smov 0  }
   0x8   :  { %s1960_s26 = smov 0   ;;  %s1962_s27 = smov 0  }
   0x9 LB: > { %s1977_s28 = sadd.s32 4294967295, %s1895_s27   ;;  %s1510_s29 = sadd.s32 4294967294, %s1895_s27   ;;  %s1895_s27 = sphi %s1962_s27, %s2258_s27   ;;  %s1891_s26 = sphi %s1960_s26, %s2257_s26   ;;  %s1887_s25 = sphi %s1958_s25, %s2256_s25   ;;  %s1883_s24 = sphi %s1956_s24, %s2255_s24  }
   0xa   : > { %p44_p0 = scmp.ne.s32.totalorder %s1887_s25, %s1883_s24  ;;  %p2233_p1 = scmp.eq.s32.totalorder %s1977_s28, 0 }
   0xb   : > { %p200_p3 = scmp.eq.s32.totalorder %s1510_s29, 1  ;;  %p1511_p5 = scmp.ge.s32.totalorder %s1895_s27, 1 }
   0xc   : > { %p1986_p4 = por %p2233_p1, %p44_p0  ;;  %p207_p7 = scmp.lt.s32.totalorder %s1895_s27, 3 }
   0xd   : > { %p1991_p6 = por %p200_p3, %p44_p0  ;;  %s1897_s10 = smov [#allocation5]  }
   0xe   : > { %s2239_s30 = scalar_select %p1986_p4, 1, 0 }
   0xf   : > { %s2240_s8 = scalar_select %p1991_p6, 1, 0 }
  0x10   : > { %p1996_p8 = pnand %p1511_p5, %p207_p7  ;;  %s219_s11 = sshll.u32 %s1897_s10, 4  ;;  %s220_s11 = int_to_ptr.vmem [resolvable:$true] %s219_s11 }
  0x11   : > { %s1898_s13 = smov [#allocation7]   ;;  %s1758_s15 = scalar_lea.vmem %s220_s11, 512 }
  0x12   : > { %s2241_s9 = scalar_select %p1996_p8, 1, 0 }
  0x13   : > { %p1659_p9 = pneg %p1996_p8  ;;  %s232_s14 = sshll.u32 %s1898_s13, 4  ;;  %s233_s14 = int_to_ptr.vmem [resolvable:$true] %s232_s14 }
  0x14   : > { %p1759_p13 = scmp.ne.s32.totalorder %s220_s11, %s1758_s15  ;;  %p1766_p5 = scmp.lt.s32.totalorder %s220_s11, %s220_s11 }
  0x15   : > { %p2005_p11 = pnand %p1659_p9, %p2233_p1  ;;  %p1767_p7 = scmp.lt.s32.totalorder %s1758_s15, %s1758_s15 }
  0x17   : > { %p1749_p12 = pneg %p2005_p11  ;;  %p1768_p10 = por %p1767_p7, %p1766_p5 }
  0x19   : > { %p1761_p0 = pnand %p1759_p13, %p1749_p12 }
  0x1b   : > { %p1762_p3 = pneg %p1761_p0 }
  0x1d   : > { %p1769_p9 = pnand %p1768_p10, %p1762_p3 }
  0x1f   : > { %1772 = shalt.err (!%p1769_p9)
}
  0x20   : > { %s1899_s16 = smov 128   ;;  %s1900_s17 = smov 8  }
  0x21   : > { %s2243_s1 = sld [smem:[#allocation12_spill]]  ;;  %s1784_s20 = scalar_lea.vmem %s233_s14, 512 }
  0x22   : > { %p1785_p1 = scmp.ne.s32.totalorder %s233_s14, %s1784_s20  ;;  %p1792_p2 = scmp.lt.s32.totalorder %s233_s14, %s233_s14 }
  0x23   : > { %p1793_p6 = scmp.lt.s32.totalorder %s1784_s20, %s1784_s20 }
  0x24   : > { %p1787_p13 = pnand %p1785_p1, %p1749_p12 }
  0x25   : > { %p1794_p5 = por %p1793_p6, %p1792_p2 }
  0x26   : > { %p1788_p0 = pneg %p1787_p13 }
  0x27   : > { %1662 = dma.hbm_to_vmem [thread:$0]  (!%p2005_p11), %s2243_s1, 512, %s220_s11, [#allocation6], %s1899_s16, %s1899_s16, %s1900_s17  }
  0x28   : > { %p1795_p10 = pnand %p1794_p5, %p1788_p0 }
  0x2a   : > { %1798 = shalt.err (!%p1795_p10)
}
  0x2b   : > { %s2244_s2 = sld [smem:[#allocation13_spill]]  ;;  %s2028_s23 = sadd.s32 1, %s1895_s27  }
  0x2c   : > { %s31_s29 = sadd.s32 1, %s1891_s26  ;;  %s28_s10 = ssub.s32 %s1895_s27, %s2028_s23 }
  0x2d   : > { %p38_p1 = scmp.ne.s32.totalorder %s1891_s26, %s1887_s25  ;;  %p29_p2 = scmp.eq.s32.totalorder %s28_s10, 0 }
  0x2e   : > { %p39_p6 = scmp.eq.s32.totalorder %s1895_s27, 0  ;;  %p2245_p12 = scmp.eq.s32.totalorder %s1977_s28, 1 }
  0x2f   : > { %p1676_p7 = scmp.lt.s32.totalorder %s1895_s27, 2  ;;  %s258_s13 = sand.u32 1, %s1891_s26  }
  0x30   : > { %p2038_p3 = por %p2245_p12, %p38_p1  ;;  %p40_p9 = por %p39_p6, %p38_p1 }
  0x31   : > { %1665 = dma.hbm_to_vmem [thread:$0]  (!%p2005_p11), %s2244_s2, 512, %s233_s14, [#allocation6], %s1899_s16, %s1899_s16, %s1900_s17  }
  0x32   : > { %s2246_s11 = scalar_select %p2038_p3, 1, 0 }
  0x33   : > { %s2044_s12 = scalar_select %p29_p2, %s1891_s26, %s31_s29  }
  0x34   : > { %s1515_s15 = sshll.u32 %s258_s13, 3  ;;  %s1516_s14 = sshll.u32 %s1895_s27, 7 }
  0x35   : > { %s2051_s18 = scalar_lea.hbm %s2225_s0, %s1516_s14  ;;  %s262_s19 = scalar_lea.vmem [#allocation2], %s1515_s15 }
  0x36   : > { %s269_s20 = sshll.u32 %s262_s19, 4  ;;  %p2053_p11 = pnand %p1676_p7, %p40_p9  ;;  %s270_s20 = int_to_ptr.vmem [resolvable:$true] %s269_s20 }
  0x37   : > { %s259_s22 = scalar_lea.sflag [#allocation3], %s258_s13  ;;  %s1799_s29 = scalar_lea.hbm %s2051_s18, 128 }
  0x38   : > { %p1800_p13 = scmp.ne.s32.totalorder %s2051_s18, %s1799_s29  ;;  %p1801_p0 = pneg %p2053_p11 }
  0x39   : > { %s1804_s16 = scalar_lea.hbm %s2225_s0, 256  ;;  %p1805_p1 = scmp.lt.s32.totalorder %s2051_s18, %s2225_s0 }
  0x3a   : > { %p1802_p5 = pnand %p1801_p0, %p1800_p13  ;;  %p1806_p2 = scmp.lt.s32.totalorder %s1804_s16, %s1799_s29 }
  0x3c   : > { %p1803_p10 = pneg %p1802_p5  ;;  %p1807_p6 = por %p1806_p2, %p1805_p1 }
  0x3e   : > { %p1808_p12 = pnand %p1807_p6, %p1803_p10 }
  0x40   : > { %1811 = shalt.err (!%p1808_p12)
}
  0x41   : > { %s1812_s19 = scalar_lea.vmem %s270_s20, 128  ;;  %s1901_s13 = smov [#allocation2]  }
  0x42   : > { %p1813_p7 = scmp.ne.s32.totalorder %s270_s20, %s1812_s19  ;;  %s1817_s1 = sshll.u32 %s1901_s13, 4  ;;  %s1818_s1 = int_to_ptr.vmem [resolvable:$false] %s1817_s1 }
  0x43   : > { %s1819_s2 = scalar_lea.vmem %s1818_s1, 256  ;;  %p1820_p13 = scmp.lt.s32.totalorder %s270_s20, %s1818_s1 }
  0x44   : > { %p1815_p9 = pnand %p1813_p7, %p1801_p0  ;;  %p1821_p5 = scmp.lt.s32.totalorder %s1819_s2, %s1812_s19 }
  0x46   : > { %p1816_p3 = pneg %p1815_p9  ;;  %p1822_p4 = por %p1821_p5, %p1820_p13 }
  0x48   : > { %p1823_p8 = pnand %p1822_p4, %p1816_p3 }
  0x4a   : > { %1826 = shalt.err (!%p1823_p8)
}
  0x4b   : > { %1669 = dma.hbm_to_vmem [thread:$0]  (!%p2053_p11), %s2051_s18, 128, %s270_s20, %s259_s22  }
  0x4c   : > { %p2248_p10 = scmp.ne.s32.totalorder %s2241_s9, 0 }
  0x4d   : > { %s2074_s29 = sand.u32 (!%p2248_p10), 1, %s1887_s25   ;;  %p2249_p4 = scmp.ne.s32.totalorder (!%p2248_p10), %s2239_s30, 0 }
  0x4e   : > { %278 = sbr.rel (%p2248_p10) target bundleno = 2382 (0x94e), region = 48  ;;  %s1518_s10 = sshll.u32 (!%p2248_p10), %s2074_s29, 3 }
  0x4f   : > { %s281_s1 = scalar_lea.sflag (!%p2248_p10), [#allocation3], %s2074_s29  ;;  %s284_s2 = scalar_lea.vmem (!%p2248_p10), [#allocation2], %s1518_s10 }
  0x53   : > { %1870 = dma.done.wait (%p2249_p4), %s281_s1, 128  }
  0x54   : > { %1872 = vsyncadd (%p2249_p4), %s281_s1, 4294967168  ;;  %p2250_p8 = scmp.eq.s32.totalorder %s1977_s28, 0 }
  0x56   : > { %1874 = dma.done.wait (%p2250_p8), [#allocation6], 1024   ;;  %p2251_p3 = pmov %p2250_p8 }
  0x57   : > { %v1902_v0 = vmov 0.0   ;;  %vm1903_vm0 = vmmov 0   ;;  %v327_v1 = vld [vmem:[#allocation5 + $0x18] sm:$0xff]  ;;  %v326_v2 = vld [vmem:[#allocation5 + $0x10] sm:$0xff]  ;;  %v325_v3 = vld [vmem:[#allocation5 + $0x8] sm:$0xff]  ;;  %vm335_vm1 = vcmask 261120  }
  0x58   : > { %1876 = vsyncadd (%p2251_p3), [#allocation6], 4294966272  ;;  %1576 = vmatprep.subr.mxu0 %v1902_v0  ;;  %1584 = vmatprep.mubr.msk.f32.mxu0 %vm1903_vm0, %v1902_v0  ;;  %v324_v4 = vld [vmem:[#allocation5] sm:$0xff]  ;;  %v2096_v5 = vld [vmem:[%s284_s2] sm:$0xff]  ;;  %s1904_s18 = smov 120   ;;  %s1905_s20 = smov 96  }
  0x59   : > { %1587 = vmatprep.subr.mxu1 %v1902_v0  ;;  %1589 = vmatprep.mubr.msk.f32.mxu1 %vm1903_vm0, %v1902_v0  ;;  %v1522_v6 = vld [vmem:[%s2228_s3] ss:$0 sm:$0xff]  ;;  %s1906_s21 = smov 88   ;;  %vm412_vm2 = vcmask 64512   ;;  %s1907_s22 = smov 56   ;;  %v574_v31 = vld [vmem:[#allocation7] sm:$0xff] }
  0x5a   : > { %1577 = vmatpush3.msra.mxu0 %v327_v1  ;;  %s1908_s14 = smov 64   ;;  %s1909_s16 = smov 80   ;;  %v740_v32 = vld [vmem:[#allocation7 + $0x8] sm:$0xff]  ;;  %v1052_v61 = vld [vmem:[#allocation7 + $0x10] sm:$0xff] }
  0x5b   : > { %1578 = vmatprep.subr.mxu0 %v1902_v0  ;;  %s1910_s17 = smov 112   ;;  %s1911_s15 = smov 48  }
  0x5c   : > { %1579 = vmatpush3.msra.mxu0 %v326_v2  ;;  %s1912_s19 = smov 72   ;;  %s1913_s13 = smov 104  }
  0x5d   : > { %1580 = vmatprep.subr.mxu0 %v1902_v0  ;;  %s1914_s1 = smov 40   ;;  %p2252_p0 = scmp.ne.s32.totalorder %s2246_s11, 0 }
  0x5e   : > { %1581 = vmatpush3.msra.mxu0 %v325_v3  ;;  %s1915_s2 = smov [#allocation8]  }
  0x5f   : > { %1582 = vmatprep.subr.mxu0 %v1902_v0 }
  0x60   : > { %1583 = vmatpush3.msra.mxu0 %v324_v4 }
  0x61   : > { %1585 = vmatmul.mubr.msk.f32.vlgmr.msra.gmra.mxu0 %vm335_vm1, %v2096_v5  ;;  %1597 = vmatprep.subr.mxu0 %v1902_v0 }
  0x62   : > { %1599 = vmatprep.mubr.msk.f32.mxu0 %vm1903_vm0, %v1902_v0 }
 0x121   : > { %v405_v7 = vpop.f32.mrf.mxu0 }
 0x122   : > { %v2107_v8 = vadd.f32 %v1522_v6, %v405_v7 }
 0x123   : > { %v1586_v9 = vpop.f32.mrf.mxu0 }
 0x124   : > { %575 = vrot.lane.b32.xlu1 %v2107_v8, %s1904_s18  ;;  %410 = vrot.lane.b32.xlu0 %v2107_v8, %s1905_s20 }
 0x128   : > { %577 = vrot.lane.b32.xlu0 %v2107_v8, %s1906_s21 }
 0x196   : > { %v411_v10 = vpop.permute.xlu0 %410  ;;  %v576_v12 = vpop.permute.xlu1 %575 }
 0x197   : > { %1588 = vmatpush3.xpose.msk.msra.mxu1 %vm412_vm2, %v411_v10 }
 0x198   : > { %1592 = vmatprep.subr.mxu1 %v1902_v0 }
 0x19a   : > { %1590 = vmatmul.mubr.msk.f32.vlgmr.msra.gmra.mxu1 %vm412_vm2, %v2107_v8  ;;  %v578_v11 = vpop.permute.xlu0 %577 }
 0x19b   : > { %1598 = vmatpush3.xpose.msk.msra.mxu0 %vm412_vm2, %v578_v11  ;;  %1594 = vmatprep.mubr.msk.f32.mxu1 %vm1903_vm0, %v1902_v0 }
 0x19c   : > { %1607 = vmatprep.subr.mxu0 %v1902_v0 }
 0x19e   : > { %1600 = vmatmul.mubr.msk.f32.vlgmr.msra.gmra.mxu0 %vm412_vm2, %v576_v12 }
 0x19f   : > { %1609 = vmatprep.mubr.msk.f32.mxu0 %vm1903_vm0, %v1902_v0  ;;  %1608 = vmatpush3.msra.mxu0 %v740_v32 }
 0x1a0   : > { %1617 = vmatprep.subr.mxu0 %v1902_v0 }
 0x25a   : > { %v483_v13 = vpop.f32.mrf.mxu1 }
 0x25b   : > { %v487_v14 = vsel %vm412_vm2, %v483_v13, -inf }
 0x25c   : > { %488 = vmax.xlane.f32.xlu1 %v487_v14  ;;  %v1591_v15 = vpop.f32.mrf.mxu1 }
 0x25e   : > { %v649_v16 = vpop.f32.mrf.mxu0 }
 0x25f   : > { %v653_v17 = vsel %vm412_vm2, %v649_v16, -inf }
 0x260   : > { %654 = vmax.xlane.f32.xlu0 %v653_v17  ;;  %v1601_v18 = vpop.f32.mrf.mxu0  ;;  %v1292_v17 = vld [vmem:[#allocation7 + $0x18] sm:$0xff] }
 0x26d   : > { %662 = vrot.lane.b32.xlu1 %v2107_v8, %s1907_s22  ;;  %s1544_s22 = sshll.u32 %s1977_s28, 7  ;;  %s1831_s28 = sshll.u32 %s1915_s2, 4  ;;  %s1832_s28 = int_to_ptr.vmem [resolvable:$false] %s1831_s28 }
 0x276   : > { %496 = vrot.lane.b32.xlu0 %v2107_v8, %s1908_s14  ;;  %s322_s14 = scalar_lea.vmem [#allocation8], %s1518_s10  ;;  %s1833_s10 = scalar_lea.vmem %s1832_s28, 256 }
 0x27a   : > { %889 = vrot.lane.b32.xlu0 %v2107_v8, %s1909_s16  ;;  %s1421_s16 = sshll.u32 %s322_s14, 4  ;;  %s1422_s16 = int_to_ptr.vmem [resolvable:$true] %s1421_s16 }
 0x27b   : > { %p1834_p6 = scmp.lt.s32.totalorder %s1422_s16, %s1832_s28 }
 0x27e   : > { %887 = vrot.lane.b32.xlu0 %v2107_v8, %s1910_s17 }
 0x2e5   : > { %v489_v19 = vpop.xlane.xlu1 %488 }
 0x2e6   : > { %v490_v20 = vsub.f32 %v483_v13, %v489_v19 }
 0x2e8   : > { %v491_v21 = vmul.f32 1.442695, %v490_v20 }
 0x2e9   : > { %v655_v22 = vpop.xlane.xlu0 %654  ;;  %v663_v27 = vpop.permute.xlu1 %662 }
 0x2ea   : > { %1729 = vpow2.f32 %v491_v21  ;;  %v656_v23 = vsub.f32 %v649_v16, %v655_v22 }
 0x2ec   : > { %v657_v24 = vmul.f32 1.442695, %v656_v23  ;;  %v1540_v23 = vld [vmem:[%s2229_s4] ss:$0 sm:$0xff] }
 0x2ed   : > { %v497_v25 = vpop.permute.xlu0 %496 }
 0x2ee   : > { %1731 = vpow2.f32 %v657_v24  ;;  %1593 = vmatpush3.msra.mxu1 %v497_v25 }
 0x2ef   : > { %1602 = vmatprep.subr.mxu1 %v1902_v0 }
 0x2f1   : > { %v890_v33 = vpop.permute.xlu0 %889 }
 0x2f5   : > { %v888_v34 = vpop.permute.xlu0 %887 }
 0x2f7   : > { %v1730_v26 = vpop.eup %1729 }
 0x2f8   : > { %1595 = vmatmul.mubr.msk.f32.vlgmr.msra.gmra.mxu1 %vm412_vm2, %v1730_v26  ;;  %v493_v28 = vsel %vm412_vm2, %v1730_v26, 0.0 }
 0x2f9   : > { %1603 = vmatpush3.msra.mxu1 %v663_v27  ;;  %494 = vadd.xlane.f32.xlu0 %v493_v28 }
 0x2fa   : > { %1604 = vmatprep.mubr.msk.f32.mxu1 %vm1903_vm0, %v1902_v0  ;;  %1612 = vmatprep.subr.mxu1 %v1902_v0 }
 0x2fb   : > { %v1732_v29 = vpop.eup %1731 }
 0x2fc   : > { %1605 = vmatmul.mubr.msk.f32.vlgmr.msra.gmra.mxu1 %vm412_vm2, %v1732_v29  ;;  %v659_v30 = vsel %vm412_vm2, %v1732_v29, 0.0 }
 0x2fd   : > { %660 = vadd.xlane.f32.xlu1 %v659_v30  ;;  %1614 = vmatprep.mubr.msk.f32.mxu1 %vm1903_vm0, %v1902_v0 }
 0x2fe   : > { %1613 = vmatpush3.msra.mxu1 %v574_v31 }
 0x2ff   : > { %1622 = vmatprep.subr.mxu1 %v1902_v0 }
 0x30e   : > { %974 = vrot.lane.b32.xlu1 %v2107_v8, %s1911_s15 }
 0x30f   : > { %1129 = vrot.lane.b32.xlu0 %v2107_v8, %s1912_s19  ;;  %s1419_s19 = scalar_lea.hbm %s2232_s7, %s1544_s22 }
 0x382   : > { %v495_v35 = vpop.xlane.xlu0 %494 }
 0x383   : > { %1733 = vrcp.f32 %v495_v35 }
 0x386   : > { %v661_v36 = vpop.xlane.xlu1 %660  ;;  %v1130_v58 = vpop.permute.xlu0 %1129 }
 0x387   : > { %1735 = vrcp.f32 %v661_v36 }
 0x38a   : > { %v975_v41 = vpop.permute.xlu1 %974 }
 0x390   : > { %v1734_v37 = vpop.eup %1733 }
 0x394   : > { %v1736_v42 = vpop.eup %1735 }
 0x3b8   : > { %v568_v38 = vpop.f32.mrf.mxu1 }
 0x3b9   : > { %v573_v39 = vmul.f32 %v1734_v37, %v568_v38 }
 0x3ba   : > { %v1596_v40 = vpop.f32.mrf.mxu1 }
 0x3bb   : > { %1615 = vmatmul.mubr.msk.f32.vlgmr.msra.gmra.mxu1 %vm412_vm2, %v573_v39  ;;  %v1542_v39 = vld [vmem:[%s2231_s6] ss:$0 sm:$0xff] }
 0x3bc   : > { %1623 = vmatpush3.msra.mxu1 %v975_v41  ;;  %v734_v43 = vpop.f32.mrf.mxu1  ;;  %1624 = vmatprep.mubr.msk.f32.mxu1 %vm1903_vm0, %v1902_v0 }
 0x3bd   : > { %v739_v44 = vmul.f32 %v1736_v42, %v734_v43  ;;  %1632 = vmatprep.subr.mxu1 %v1902_v0 }
 0x3be   : > { %v1606_v45 = vpop.f32.mrf.mxu1 }
 0x3bf   : > { %1610 = vmatmul.mubr.msk.f32.vlgmr.msra.gmra.mxu0 %vm412_vm2, %v739_v44 }
 0x3c0   : > { %1618 = vmatpush3.xpose.msk.msra.mxu0 %vm412_vm2, %v890_v33  ;;  %1619 = vmatprep.mubr.msk.f32.mxu0 %vm1903_vm0, %v1902_v0 }
 0x3c1   : > { %1627 = vmatprep.subr.mxu0 %v1902_v0 }
 0x3c3   : > { %1620 = vmatmul.mubr.msk.f32.vlgmr.msra.gmra.mxu0 %vm412_vm2, %v888_v34 }
 0x3c4   : > { %1629 = vmatprep.mubr.msk.f32.mxu0 %vm1903_vm0, %v1902_v0  ;;  %1628 = vmatpush3.msra.mxu0 %v1052_v61 }
 0x3c5   : > { %1637 = vmatprep.subr.mxu0 %v1902_v0 }
 0x47b   : > { %v883_v46 = vpop.f32.mrf.mxu1 }
 0x47d   : > { %v1616_v47 = vpop.f32.mrf.mxu1 }
 0x47f   : > { %v810_v48 = vpop.f32.mrf.mxu0 }
 0x480   : > { %v884_v49 = vadd.f32 %v883_v46, %v810_v48 }
 0x481   : > { %v1611_v50 = vpop.f32.mrf.mxu0 }
 0x483   : > { %v961_v51 = vpop.f32.mrf.mxu0 }
 0x484   : > { %v965_v52 = vsel %vm412_vm2, %v961_v51, -inf }
 0x485   : > { %966 = vmax.xlane.f32.xlu1 %v965_v52  ;;  %v1621_v53 = vpop.f32.mrf.mxu0 }
 0x496   : > { %1127 = vrot.lane.b32.xlu1 %v2107_v8, %s1913_s13  ;;  %s1408_s13 = scalar_lea.sflag [#allocation4], %s2074_s29 }
 0x50e   : > { %v967_v54 = vpop.xlane.xlu1 %966 }
 0x50f   : > { %v968_v55 = vsub.f32 %v961_v51, %v967_v54 }
 0x511   : > { %v969_v56 = vmul.f32 1.442695, %v968_v55 }
 0x512   : > { %v1128_v60 = vpop.permute.xlu1 %1127 }
 0x513   : > { %1737 = vpow2.f32 %v969_v56 }
 0x520   : > { %v1738_v57 = vpop.eup %1737 }
 0x521   : > { %1625 = vmatmul.mubr.msk.f32.vlgmr.msra.gmra.mxu1 %vm412_vm2, %v1738_v57  ;;  %v971_v59 = vsel %vm412_vm2, %v1738_v57, 0.0 }
 0x522   : > { %1633 = vmatpush3.xpose.msk.msra.mxu1 %vm412_vm2, %v1130_v58  ;;  %972 = vadd.xlane.f32.xlu1 %v971_v59 }
 0x523   : > { %1634 = vmatprep.mubr.msk.f32.mxu1 %vm1903_vm0, %v1902_v0  ;;  %1642 = vmatprep.subr.mxu1 %v1902_v0 }
 0x525   : > { %1635 = vmatmul.mubr.msk.f32.vlgmr.msra.gmra.mxu1 %vm412_vm2, %v1128_v60 }
 0x526   : > { %1644 = vmatprep.mubr.msk.f32.mxu1 %vm1903_vm0, %v1902_v0  ;;  %1643 = vmatpush3.msra.mxu1 %v1292_v17 }
 0x5ab   : > { %v973_v62 = vpop.xlane.xlu1 %972 }
 0x5ac   : > { %1739 = vrcp.f32 %v973_v62 }
 0x5b9   : > { %v1740_v63 = vpop.eup %1739 }
 0x5e1   : > { %v1046_v1 = vpop.f32.mrf.mxu1 }
 0x5e2   : > { %v1051_v2 = vmul.f32 %v1740_v63, %v1046_v1 }
 0x5e3   : > { %v1626_v3 = vpop.f32.mrf.mxu1 }
 0x5e4   : > { %1630 = vmatmul.mubr.msk.f32.vlgmr.msra.gmra.mxu0 %vm412_vm2, %v1051_v2 }
 0x5e5   : > { %v1201_v4 = vpop.f32.mrf.mxu1  ;;  %1639 = vmatprep.mubr.msk.f32.mxu0 %vm1903_vm0, %v1902_v0 }
 0x5e6   : > { %v1205_v6 = vsel %vm412_vm2, %v1201_v4, -inf }
 0x5e7   : > { %1206 = vmax.xlane.f32.xlu0 %v1205_v6  ;;  %v1636_v7 = vpop.f32.mrf.mxu1 }
 0x5fd   : > { %1214 = vrot.lane.b32.xlu0 %v2107_v8, %s1914_s1  ;;  %s1827_s1 = scalar_lea.vmem %s1422_s16, 128 }
 0x5fe   : > { %p1828_p11 = scmp.ne.s32.totalorder %s1422_s16, %s1827_s1  ;;  %p1835_p12 = scmp.lt.s32.totalorder %s1833_s10, %s1827_s1 }
 0x600   : > { %p1829_p1 = pnand %p1828_p11, %p2252_p0  ;;  %p1836_p7 = por %p1835_p12, %p1834_p6 }
 0x602   : > { %p1830_p2 = pneg %p1829_p1 }
 0x604   : > { %p1837_p9 = pnand %p1836_p7, %p1830_p2 }
 0x670   : > { %v1207_v9 = vpop.xlane.xlu0 %1206 }
 0x671   : > { %v1208_v10 = vsub.f32 %v1201_v4, %v1207_v9 }
 0x673   : > { %v1209_v11 = vmul.f32 1.442695, %v1208_v10 }
 0x674   : > { %v1215_v12 = vpop.permute.xlu0 %1214 }
 0x675   : > { %1741 = vpow2.f32 %v1209_v11  ;;  %1638 = vmatpush3.msra.mxu0 %v1215_v12 }
 0x682   : > { %v1742_v13 = vpop.eup %1741 }
 0x683   : > { %1640 = vmatmul.mubr.msk.f32.vlgmr.msra.gmra.mxu0 %vm412_vm2, %v1742_v13  ;;  %v1211_v14 = vsel %vm412_vm2, %v1742_v13, 0.0 }
 0x684   : > { %1212 = vadd.xlane.f32.xlu1 %v1211_v14 }
 0x6a4   : > { %v1122_v0 = vpop.f32.mrf.mxu0 }
 0x6a5   : > { %v1126_v15 = vadd.f32 %v1122_v0, %v884_v49 }
 0x6a6   : > { %v1631_v16 = vpop.f32.mrf.mxu0 }
 0x70d   : > { %v1213_v18 = vpop.xlane.xlu1 %1212 }
 0x70e   : > { %1743 = vrcp.f32 %v1213_v18 }
 0x71b   : > { %v1744_v8 = vpop.eup %1743 }
 0x743   : > { %v1286_v19 = vpop.f32.mrf.mxu0 }
 0x744   : > { %v1291_v20 = vmul.f32 %v1744_v8, %v1286_v19 }
 0x745   : > { %v1641_v21 = vpop.f32.mrf.mxu0 }
 0x746   : > { %1645 = vmatmul.mubr.msk.f32.vlgmr.msra.gmra.mxu1 %vm412_vm2, %v1291_v20 }
 0x806   : > { %v1362_v22 = vpop.f32.mrf.mxu1 }
 0x807   : > { %v1366_v24 = vadd.f32 %v1362_v22, %v1126_v15 }
 0x808   : > { %v1646_v25 = vpop.f32.mrf.mxu1 }
 0x809   : > { %v1374_v26 = vadd.f32 %v1540_v23, %v1366_v24 }
 0x80b   : > { %v1375_v27 = vadd.f32 %v1374_v26, %v2096_v5  ;;  %v1541_v5 = vld [vmem:[%s2230_s5] ss:$0 sm:$0xff] }
 0x80d   : > { %v1376_v28 = vsel %vm335_vm1, %v1375_v27, 0.0 }
 0x80e   : > { %1377 = vadd.xlane.f32.xlu1 %v1376_v28 }
 0x897   : > { %v1378_v29 = vpop.xlane.xlu1 %1377 }
 0x898   : > { %v1380_v30 = vmul.f32 0.03125, %v1378_v29 }
 0x89a   : > { %v1381_v31 = vsub.f32 %v1375_v27, %v1380_v30 }
 0x89c   : > { %v1382_v32 = vmul.f32 %v1381_v31, %v1381_v31 }
 0x89e   : > { %v1383_v33 = vsel %vm335_vm1, %v1382_v32, 0.0 }
 0x89f   : > { %1384 = vadd.xlane.f32.xlu1 %v1383_v33 }
 0x928   : > { %v1385_v34 = vpop.xlane.xlu1 %1384 }
 0x929   : > { %v1386_v35 = vmul.f32 0.03125, %v1385_v34 }
 0x92b   : > { %v1387_v36 = vadd.f32 1e-05, %v1386_v35 }
 0x92d   : > { %1745 = vrsqrt.f32 %v1387_v36 }
 0x93a   : > { %v1746_v37 = vpop.eup %1745 }
 0x93b   : > { %v1389_v38 = vmul.f32 %v1746_v37, %v1381_v31 }
 0x93d   : > { %v1397_v40 = vmul.f32 %v1541_v5, %v1389_v38 }
 0x93f   : > { %v1405_v41 = vadd.f32 %v1542_v39, %v1397_v40 }
 0x941   : > { %1406 = vst.msk [vmem:[%s322_s14] sm:$0xff] %vm335_vm1, %v1405_v41 }
 0x942   : > { %1840 = shalt.err (!%p1837_p9)
}
 0x943   : > { %s1841_s30 = scalar_lea.hbm %s1419_s19, 128  ;;  %s1845_s18 = scalar_lea.hbm %s2232_s7, 256 }
 0x944   : > { %p1842_p13 = scmp.ne.s32.totalorder %s1419_s19, %s1841_s30  ;;  %p1846_p4 = scmp.lt.s32.totalorder %s1419_s19, %s2232_s7 }
 0x945   : > { %p1847_p8 = scmp.lt.s32.totalorder %s1845_s18, %s1841_s30 }
 0x946   : > { %p1843_p5 = pnand %p1842_p13, %p2252_p0 }
 0x947   : > { %p1848_p3 = por %p1847_p8, %p1846_p4 }
 0x948   : > { %p1844_p10 = pneg %p1843_p5 }
 0x94a   : > { %p1849_p11 = pnand %p1848_p3, %p1844_p10 }
 0x94c   : > { %1852 = shalt.err (!%p1849_p11)
}
 0x94d   : > { %1657 = dma.vmem_to_hbm [thread:$0]  (%p2252_p0), %s1422_s16, 128, %s1419_s19, %s1408_s13  }
 0x94e PF: > { %s1433_s22 = sand.u32 1, %s1883_s24   ;;  %p2253_p1 = scmp.ne.s32.totalorder %s2240_s8, 0 }
 0x94f   : > { %p2254_p2 = scmp.ge.s32.totalorder %s1895_s27, 2  ;;  %s1434_s14 = scalar_lea.sflag [#allocation4], %s1433_s22 }
 0x951   : > { %p1671_p6 = pnand %p2254_p2, %p2253_p1 }
 0x953   : > { %p1672_p12 = pneg %p1671_p6 }
 0x955   : > { %1878 = dma.done.wait (%p1672_p12), %s1434_s14, 128  }
 0x956   : > { %1880 = vsyncadd (%p1672_p12), %s1434_s14, 4294967168  ;;  %p21_p7 = scmp.ge.s32.totalorder %s2028_s23, 4   ;;  %s2255_s24 = smov %s1887_s25 }
 0x957   : > { %s2256_s25 = smov %s1891_s26  ;;  %s2257_s26 = smov %s2044_s12 }
 0x958   : > { %s2258_s27 = smov %s2028_s23  ;;  %23 = sbr.rel (!%p21_p7) target bundleno = 9 (0x9), region = 101 }
 0x95d   :  { %1439 = vsyncpa [#allocation3], 1 }
 0x95e   :  { %1441 = vsyncpa [#allocation3 + $0x1], 1 }
 0x95f   :  { %1442 = vsyncpa [#allocation6], 1 }
 0x960   :  { %1443 = vsyncpa [#allocation4], 1 }
 0x961   :  { %1445 = vsyncpa [#allocation4 + $0x1], 1 }

// kernel: tpu_custom_call.1
= control target key start
LH: loop header
LB: loop body
LE: loop exit
PB: predicated region body
PF: predicated region fallthrough
CT: control target
= control target key end

     0   :  { %s2225_s0 = inlined_call_operand.hbm [shape: f32[2,8,32], index: 0, kind: input, shape index: {}]   ;;  %s2226_s1 = inlined_call_operand.hbm [shape: f32[32,96], index: 1, kind: input, shape index: {}]   ;;  %s2227_s2 = inlined_call_operand.hbm [shape: f32[32,32], index: 2, kind: input, shape index: {}]   ;;  %s2228_s3 = inlined_call_operand.vmem [shape: f32[1,96], index: 3, kind: input, shape index: {}]   ;;  %s2229_s4 = inlined_call_operand.vmem [shape: f32[1,32], index: 4, kind: input, shape index: {}]   ;;  %s2230_s5 = inlined_call_operand.vmem [shape: f32[1,32], index: 5, kind: input, shape index: {}]   ;;  %s2231_s6 = inlined_call_operand.vmem [shape: f32[1,32], index: 6, kind: input, shape index: {}]   ;;  %s2232_s7 = inlined_call_operand.hbm [shape: f32[2,8,32], index: 7, kind: output, shape index: {}]  }
   0x1   :  { %2237 = sst [smem:[#allocation12_spill]] %s2226_s1 }
   0x2   :  { %2238 = sst [smem:[#allocation13_spill]] %s2227_s2 }
   0x3   :  { %12 = vsyncpa [#allocation3], 0 }
   0x4   :  { %14 = vsyncpa [#allocation3 + $0x1], 0 }
   0x5   :  { %15 = vsyncpa [#allocation6], 0 }
   0x6   :  { %16 = vsyncpa [#allocation4], 0 }
   0x7   :  { %18 = vsyncpa [#allocation4 + $0x1], 0  ;;  %s1956_s24 = smov 0   ;;  %s1958_s25 = smov 0  }
   0x8   :  { %s1960_s26 = smov 0   ;;  %s1962_s27 = smov 0  }
   0x9 LB: > { %s1977_s28 = sadd.s32 4294967295, %s1895_s27   ;;  %s1510_s29 = sadd.s32 4294967294, %s1895_s27   ;;  %s1895_s27 = sphi %s1962_s27, %s2258_s27   ;;  %s1891_s26 = sphi %s1960_s26, %s2257_s26   ;;  %s1887_s25 = sphi %s1958_s25, %s2256_s25   ;;  %s1883_s24 = sphi %s1956_s24, %s2255_s24  }
   0xa   : > { %p44_p0 = scmp.ne.s32.totalorder %s1887_s25, %s1883_s24  ;;  %p2233_p1 = scmp.eq.s32.totalorder %s1977_s28, 0 }
   0xb   : > { %p200_p3 = scmp.eq.s32.totalorder %s1510_s29, 1  ;;  %p1511_p5 = scmp.ge.s32.totalorder %s1895_s27, 1 }
   0xc   : > { %p1986_p4 = por %p2233_p1, %p44_p0  ;;  %p207_p7 = scmp.lt.s32.totalorder %s1895_s27, 3 }
   0xd   : > { %p1991_p6 = por %p200_p3, %p44_p0  ;;  %s1897_s10 = smov [#allocation5]  }
   0xe   : > { %s2239_s30 = scalar_select %p1986_p4, 1, 0 }
   0xf   : > { %s2240_s8 = scalar_select %p1991_p6, 1, 0 }
  0x10   : > { %p1996_p8 = pnand %p1511_p5, %p207_p7  ;;  %s219_s11 = sshll.u32 %s1897_s10, 4  ;;  %s220_s11 = int_to_ptr.vmem [resolvable:$true] %s219_s11 }
  0x11   : > { %s1898_s13 = smov [#allocation7]   ;;  %s1758_s15 = scalar_lea.vmem %s220_s11, 512 }
  0x12   : > { %s2241_s9 = scalar_select %p1996_p8, 1, 0 }
  0x13   : > { %p1659_p9 = pneg %p1996_p8  ;;  %s232_s14 = sshll.u32 %s1898_s13, 4  ;;  %s233_s14 = int_to_ptr.vmem [resolvable:$true] %s232_s14 }
  0x14   : > { %p1759_p13 = scmp.ne.s32.totalorder %s220_s11, %s1758_s15  ;;  %p1766_p5 = scmp.lt.s32.totalorder %s220_s11, %s220_s11 }
  0x15   : > { %p2005_p11 = pnand %p1659_p9, %p2233_p1  ;;  %p1767_p7 = scmp.lt.s32.totalorder %s1758_s15, %s1758_s15 }
  0x17   : > { %p1749_p12 = pneg %p2005_p11  ;;  %p1768_p10 = por %p1767_p7, %p1766_p5 }
  0x19   : > { %p1761_p0 = pnand %p1759_p13, %p1749_p12 }
  0x1b   : > { %p1762_p3 = pneg %p1761_p0 }
  0x1d   : > { %p1769_p9 = pnand %p1768_p10, %p1762_p3 }
  0x1f   : > { %1772 = shalt.err (!%p1769_p9)
}
  0x20   : > { %s1899_s16 = smov 128   ;;  %s1900_s17 = smov 8  }
  0x21   : > { %s2243_s1 = sld [smem:[#allocation12_spill]]  ;;  %s1784_s20 = scalar_lea.vmem %s233_s14, 512 }
  0x22   : > { %p1785_p1 = scmp.ne.s32.totalorder %s233_s14, %s1784_s20  ;;  %p1792_p2 = scmp.lt.s32.totalorder %s233_s14, %s233_s14 }
  0x23   : > { %p1793_p6 = scmp.lt.s32.totalorder %s1784_s20, %s1784_s20 }
  0x24   : > { %p1787_p13 = pnand %p1785_p1, %p1749_p12 }
  0x25   : > { %p1794_p5 = por %p1793_p6, %p1792_p2 }
  0x26   : > { %p1788_p0 = pneg %p1787_p13 }
  0x27   : > { %1662 = dma.hbm_to_vmem [thread:$0]  (!%p2005_p11), %s2243_s1, 512, %s220_s11, [#allocation6], %s1899_s16, %s1899_s16, %s1900_s17  }
  0x28   : > { %p1795_p10 = pnand %p1794_p5, %p1788_p0 }
  0x2a   : > { %1798 = shalt.err (!%p1795_p10)
}
  0x2b   : > { %s2244_s2 = sld [smem:[#allocation13_spill]]  ;;  %s2028_s23 = sadd.s32 1, %s1895_s27  }
  0x2c   : > { %s31_s29 = sadd.s32 1, %s1891_s26  ;;  %s28_s10 = ssub.s32 %s1895_s27, %s2028_s23 }
  0x2d   : > { %p38_p1 = scmp.ne.s32.totalorder %s1891_s26, %s1887_s25  ;;  %p29_p2 = scmp.eq.s32.totalorder %s28_s10, 0 }
  0x2e   : > { %p39_p6 = scmp.eq.s32.totalorder %s1895_s27, 0  ;;  %p2245_p12 = scmp.eq.s32.totalorder %s1977_s28, 1 }
  0x2f   : > { %p1676_p7 = scmp.lt.s32.totalorder %s1895_s27, 2  ;;  %s258_s13 = sand.u32 1, %s1891_s26  }
  0x30   : > { %p2038_p3 = por %p2245_p12, %p38_p1  ;;  %p40_p9 = por %p39_p6, %p38_p1 }
  0x31   : > { %1665 = dma.hbm_to_vmem [thread:$0]  (!%p2005_p11), %s2244_s2, 512, %s233_s14, [#allocation6], %s1899_s16, %s1899_s16, %s1900_s17  }
  0x32   : > { %s2246_s11 = scalar_select %p2038_p3, 1, 0 }
  0x33   : > { %s2044_s12 = scalar_select %p29_p2, %s1891_s26, %s31_s29  }
  0x34   : > { %s1515_s15 = sshll.u32 %s258_s13, 3  ;;  %s1516_s14 = sshll.u32 %s1895_s27, 7 }
  0x35   : > { %s2051_s18 = scalar_lea.hbm %s2225_s0, %s1516_s14  ;;  %s262_s19 = scalar_lea.vmem [#allocation2], %s1515_s15 }
  0x36   : > { %s269_s20 = sshll.u32 %s262_s19, 4  ;;  %p2053_p11 = pnand %p1676_p7, %p40_p9  ;;  %s270_s20 = int_to_ptr.vmem [resolvable:$true] %s269_s20 }
  0x37   : > { %s259_s22 = scalar_lea.sflag [#allocation3], %s258_s13  ;;  %s1799_s29 = scalar_lea.hbm %s2051_s18, 128 }
  0x38   : > { %p1800_p13 = scmp.ne.s32.totalorder %s2051_s18, %s1799_s29  ;;  %p1801_p0 = pneg %p2053_p11 }
  0x39   : > { %s1804_s16 = scalar_lea.hbm %s2225_s0, 256  ;;  %p1805_p1 = scmp.lt.s32.totalorder %s2051_s18, %s2225_s0 }
  0x3a   : > { %p1802_p5 = pnand %p1801_p0, %p1800_p13  ;;  %p1806_p2 = scmp.lt.s32.totalorder %s1804_s16, %s1799_s29 }
  0x3c   : > { %p1803_p10 = pneg %p1802_p5  ;;  %p1807_p6 = por %p1806_p2, %p1805_p1 }
  0x3e   : > { %p1808_p12 = pnand %p1807_p6, %p1803_p10 }
  0x40   : > { %1811 = shalt.err (!%p1808_p12)
}
  0x41   : > { %s1812_s19 = scalar_lea.vmem %s270_s20, 128  ;;  %s1901_s13 = smov [#allocation2]  }
  0x42   : > { %p1813_p7 = scmp.ne.s32.totalorder %s270_s20, %s1812_s19  ;;  %s1817_s1 = sshll.u32 %s1901_s13, 4  ;;  %s1818_s1 = int_to_ptr.vmem [resolvable:$false] %s1817_s1 }
  0x43   : > { %s1819_s2 = scalar_lea.vmem %s1818_s1, 256  ;;  %p1820_p13 = scmp.lt.s32.totalorder %s270_s20, %s1818_s1 }
  0x44   : > { %p1815_p9 = pnand %p1813_p7, %p1801_p0  ;;  %p1821_p5 = scmp.lt.s32.totalorder %s1819_s2, %s1812_s19 }
  0x46   : > { %p1816_p3 = pneg %p1815_p9  ;;  %p1822_p4 = por %p1821_p5, %p1820_p13 }
  0x48   : > { %p1823_p8 = pnand %p1822_p4, %p1816_p3 }
  0x4a   : > { %1826 = shalt.err (!%p1823_p8)
}
  0x4b   : > { %1669 = dma.hbm_to_vmem [thread:$0]  (!%p2053_p11), %s2051_s18, 128, %s270_s20, %s259_s22  }
  0x4c   : > { %p2248_p10 = scmp.ne.s32.totalorder %s2241_s9, 0 }
  0x4d   : > { %s2074_s29 = sand.u32 (!%p2248_p10), 1, %s1887_s25   ;;  %p2249_p4 = scmp.ne.s32.totalorder (!%p2248_p10), %s2239_s30, 0 }
  0x4e   : > { %278 = sbr.rel (%p2248_p10) target bundleno = 2382 (0x94e), region = 48  ;;  %s1518_s10 = sshll.u32 (!%p2248_p10), %s2074_s29, 3 }
  0x4f   : > { %s281_s1 = scalar_lea.sflag (!%p2248_p10), [#allocation3], %s2074_s29  ;;  %s284_s2 = scalar_lea.vmem (!%p2248_p10), [#allocation2], %s1518_s10 }
  0x53   : > { %1870 = dma.done.wait (%p2249_p4), %s281_s1, 128  }
  0x54   : > { %1872 = vsyncadd (%p2249_p4), %s281_s1, 4294967168  ;;  %p2250_p8 = scmp.eq.s32.totalorder %s1977_s28, 0 }
  0x56   : > { %1874 = dma.done.wait (%p2250_p8), [#allocation6], 1024   ;;  %p2251_p3 = pmov %p2250_p8 }
  0x57   : > { %v1902_v0 = vmov 0.0   ;;  %vm1903_vm0 = vmmov 0   ;;  %v327_v1 = vld [vmem:[#allocation5 + $0x18] sm:$0xff]  ;;  %v326_v2 = vld [vmem:[#allocation5 + $0x10] sm:$0xff]  ;;  %v325_v3 = vld [vmem:[#allocation5 + $0x8] sm:$0xff]  ;;  %vm335_vm1 = vcmask 261120  }
  0x58   : > { %1876 = vsyncadd (%p2251_p3), [#allocation6], 4294966272  ;;  %1576 = vmatprep.subr.mxu0 %v1902_v0  ;;  %1584 = vmatprep.mubr.msk.f32.mxu0 %vm1903_vm0, %v1902_v0  ;;  %v324_v4 = vld [vmem:[#allocation5] sm:$0xff]  ;;  %v2096_v5 = vld [vmem:[%s284_s2] sm:$0xff]  ;;  %s1904_s18 = smov 120   ;;  %s1905_s20 = smov 96  }
  0x59   : > { %1587 = vmatprep.subr.mxu1 %v1902_v0  ;;  %1589 = vmatprep.mubr.msk.f32.mxu1 %vm1903_vm0, %v1902_v0  ;;  %v1522_v6 = vld [vmem:[%s2228_s3] ss:$0 sm:$0xff]  ;;  %s1906_s21 = smov 88   ;;  %vm412_vm2 = vcmask 64512   ;;  %s1907_s22 = smov 56   ;;  %v574_v31 = vld [vmem:[#allocation7] sm:$0xff] }
  0x5a   : > { %1577 = vmatpush3.msra.mxu0 %v327_v1  ;;  %s1908_s14 = smov 64   ;;  %s1909_s16 = smov 80   ;;  %v740_v32 = vld [vmem:[#allocation7 + $0x8] sm:$0xff]  ;;  %v1052_v61 = vld [vmem:[#allocation7 + $0x10] sm:$0xff] }
  0x5b   : > { %1578 = vmatprep.subr.mxu0 %v1902_v0  ;;  %s1910_s17 = smov 112   ;;  %s1911_s15 = smov 48  }
  0x5c   : > { %1579 = vmatpush3.msra.mxu0 %v326_v2  ;;  %s1912_s19 = smov 72   ;;  %s1913_s13 = smov 104  }
  0x5d   : > { %1580 = vmatprep.subr.mxu0 %v1902_v0  ;;  %s1914_s1 = smov 40   ;;  %p2252_p0 = scmp.ne.s32.totalorder %s2246_s11, 0 }
  0x5e   : > { %1581 = vmatpush3.msra.mxu0 %v325_v3  ;;  %s1915_s2 = smov [#allocation8]  }
  0x5f   : > { %1582 = vmatprep.subr.mxu0 %v1902_v0 }
  0x60   : > { %1583 = vmatpush3.msra.mxu0 %v324_v4 }
  0x61   : > { %1585 = vmatmul.mubr.msk.f32.vlgmr.msra.gmra.mxu0 %vm335_vm1, %v2096_v5  ;;  %1597 = vmatprep.subr.mxu0 %v1902_v0 }
  0x62   : > { %1599 = vmatprep.mubr.msk.f32.mxu0 %vm1903_vm0, %v1902_v0 }
 0x121   : > { %v405_v7 = vpop.f32.mrf.mxu0 }
 0x122   : > { %v2107_v8 = vadd.f32 %v1522_v6, %v405_v7 }
 0x123   : > { %v1586_v9 = vpop.f32.mrf.mxu0 }
 0x124   : > { %575 = vrot.lane.b32.xlu1 %v2107_v8, %s1904_s18  ;;  %410 = vrot.lane.b32.xlu0 %v2107_v8, %s1905_s20 }
 0x128   : > { %577 = vrot.lane.b32.xlu0 %v2107_v8, %s1906_s21 }
 0x196   : > { %v411_v10 = vpop.permute.xlu0 %410  ;;  %v576_v12 = vpop.permute.xlu1 %575 }
 0x197   : > { %1588 = vmatpush3.xpose.msk.msra.mxu1 %vm412_vm2, %v411_v10 }
 0x198   : > { %1592 = vmatprep.subr.mxu1 %v1902_v0 }
 0x19a   : > { %1590 = vmatmul.mubr.msk.f32.vlgmr.msra.gmra.mxu1 %vm412_vm2, %v2107_v8  ;;  %v578_v11 = vpop.permute.xlu0 %577 }
 0x19b   : > { %1598 = vmatpush3.xpose.msk.msra.mxu0 %vm412_vm2, %v578_v11  ;;  %1594 = vmatprep.mubr.msk.f32.mxu1 %vm1903_vm0, %v1902_v0 }
 0x19c   : > { %1607 = vmatprep.subr.mxu0 %v1902_v0 }
 0x19e   : > { %1600 = vmatmul.mubr.msk.f32.vlgmr.msra.gmra.mxu0 %vm412_vm2, %v576_v12 }
 0x19f   : > { %1609 = vmatprep.mubr.msk.f32.mxu0 %vm1903_vm0, %v1902_v0  ;;  %1608 = vmatpush3.msra.mxu0 %v740_v32 }
 0x1a0   : > { %1617 = vmatprep.subr.mxu0 %v1902_v0 }
 0x25a   : > { %v483_v13 = vpop.f32.mrf.mxu1 }
 0x25b   : > { %v487_v14 = vsel %vm412_vm2, %v483_v13, -inf }
 0x25c   : > { %488 = vmax.xlane.f32.xlu1 %v487_v14  ;;  %v1591_v15 = vpop.f32.mrf.mxu1 }
 0x25e   : > { %v649_v16 = vpop.f32.mrf.mxu0 }
 0x25f   : > { %v653_v17 = vsel %vm412_vm2, %v649_v16, -inf }
 0x260   : > { %654 = vmax.xlane.f32.xlu0 %v653_v17  ;;  %v1601_v18 = vpop.f32.mrf.mxu0  ;;  %v1292_v17 = vld [vmem:[#allocation7 + $0x18] sm:$0xff] }
 0x26d   : > { %662 = vrot.lane.b32.xlu1 %v2107_v8, %s1907_s22  ;;  %s1544_s22 = sshll.u32 %s1977_s28, 7  ;;  %s1831_s28 = sshll.u32 %s1915_s2, 4  ;;  %s1832_s28 = int_to_ptr.vmem [resolvable:$false] %s1831_s28 }
 0x276   : > { %496 = vrot.lane.b32.xlu0 %v2107_v8, %s1908_s14  ;;  %s322_s14 = scalar_lea.vmem [#allocation8], %s1518_s10  ;;  %s1833_s10 = scalar_lea.vmem %s1832_s28, 256 }
 0x27a   : > { %889 = vrot.lane.b32.xlu0 %v2107_v8, %s1909_s16  ;;  %s1421_s16 = sshll.u32 %s322_s14, 4  ;;  %s1422_s16 = int_to_ptr.vmem [resolvable:$true] %s1421_s16 }
 0x27b   : > { %p1834_p6 = scmp.lt.s32.totalorder %s1422_s16, %s1832_s28 }
 0x27e   : > { %887 = vrot.lane.b32.xlu0 %v2107_v8, %s1910_s17 }
 0x2e5   : > { %v489_v19 = vpop.xlane.xlu1 %488 }
 0x2e6   : > { %v490_v20 = vsub.f32 %v483_v13, %v489_v19 }
 0x2e8   : > { %v491_v21 = vmul.f32 1.442695, %v490_v20 }
 0x2e9   : > { %v655_v22 = vpop.xlane.xlu0 %654  ;;  %v663_v27 = vpop.permute.xlu1 %662 }
 0x2ea   : > { %1729 = vpow2.f32 %v491_v21  ;;  %v656_v23 = vsub.f32 %v649_v16, %v655_v22 }
 0x2ec   : > { %v657_v24 = vmul.f32 1.442695, %v656_v23  ;;  %v1540_v23 = vld [vmem:[%s2229_s4] ss:$0 sm:$0xff] }
 0x2ed   : > { %v497_v25 = vpop.permute.xlu0 %496 }
 0x2ee   : > { %1731 = vpow2.f32 %v657_v24  ;;  %1593 = vmatpush3.msra.mxu1 %v497_v25 }
 0x2ef   : > { %1602 = vmatprep.subr.mxu1 %v1902_v0 }
 0x2f1   : > { %v890_v33 = vpop.permute.xlu0 %889 }
 0x2f5   : > { %v888_v34 = vpop.permute.xlu0 %887 }
 0x2f7   : > { %v1730_v26 = vpop.eup %1729 }
 0x2f8   : > { %1595 = vmatmul.mubr.msk.f32.vlgmr.msra.gmra.mxu1 %vm412_vm2, %v1730_v26  ;;  %v493_v28 = vsel %vm412_vm2, %v1730_v26, 0.0 }
 0x2f9   : > { %1603 = vmatpush3.msra.mxu1 %v663_v27  ;;  %494 = vadd.xlane.f32.xlu0 %v493_v28 }
 0x2fa   : > { %1604 = vmatprep.mubr.msk.f32.mxu1 %vm1903_vm0, %v1902_v0  ;;  %1612 = vmatprep.subr.mxu1 %v1902_v0 }
 0x2fb   : > { %v1732_v29 = vpop.eup %1731 }
 0x2fc   : > { %1605 = vmatmul.mubr.msk.f32.vlgmr.msra.gmra.mxu1 %vm412_vm2, %v1732_v29  ;;  %v659_v30 = vsel %vm412_vm2, %v1732_v29, 0.0 }
 0x2fd   : > { %660 = vadd.xlane.f32.xlu1 %v659_v30  ;;  %1614 = vmatprep.mubr.msk.f32.mxu1 %vm1903_vm0, %v1902_v0 }
 0x2fe   : > { %1613 = vmatpush3.msra.mxu1 %v574_v31 }
 0x2ff   : > { %1622 = vmatprep.subr.mxu1 %v1902_v0 }
 0x30e   : > { %974 = vrot.lane.b32.xlu1 %v2107_v8, %s1911_s15 }
 0x30f   : > { %1129 = vrot.lane.b32.xlu0 %v2107_v8, %s1912_s19  ;;  %s1419_s19 = scalar_lea.hbm %s2232_s7, %s1544_s22 }
 0x382   : > { %v495_v35 = vpop.xlane.xlu0 %494 }
 0x383   : > { %1733 = vrcp.f32 %v495_v35 }
 0x386   : > { %v661_v36 = vpop.xlane.xlu1 %660  ;;  %v1130_v58 = vpop.permute.xlu0 %1129 }
 0x387   : > { %1735 = vrcp.f32 %v661_v36 }
 0x38a   : > { %v975_v41 = vpop.permute.xlu1 %974 }
 0x390   : > { %v1734_v37 = vpop.eup %1733 }
 0x394   : > { %v1736_v42 = vpop.eup %1735 }
 0x3b8   : > { %v568_v38 = vpop.f32.mrf.mxu1 }
 0x3b9   : > { %v573_v39 = vmul.f32 %v1734_v37, %v568_v38 }
 0x3ba   : > { %v1596_v40 = vpop.f32.mrf.mxu1 }
 0x3bb   : > { %1615 = vmatmul.mubr.msk.f32.vlgmr.msra.gmra.mxu1 %vm412_vm2, %v573_v39  ;;  %v1542_v39 = vld [vmem:[%s2231_s6] ss:$0 sm:$0xff] }
 0x3bc   : > { %1623 = vmatpush3.msra.mxu1 %v975_v41  ;;  %v734_v43 = vpop.f32.mrf.mxu1  ;;  %1624 = vmatprep.mubr.msk.f32.mxu1 %vm1903_vm0, %v1902_v0 }
 0x3bd   : > { %v739_v44 = vmul.f32 %v1736_v42, %v734_v43  ;;  %1632 = vmatprep.subr.mxu1 %v1902_v0 }
 0x3be   : > { %v1606_v45 = vpop.f32.mrf.mxu1 }
 0x3bf   : > { %1610 = vmatmul.mubr.msk.f32.vlgmr.msra.gmra.mxu0 %vm412_vm2, %v739_v44 }
 0x3c0   : > { %1618 = vmatpush3.xpose.msk.msra.mxu0 %vm412_vm2, %v890_v33  ;;  %1619 = vmatprep.mubr.msk.f32.mxu0 %vm1903_vm0, %v1902_v0 }
 0x3c1   : > { %1627 = vmatprep.subr.mxu0 %v1902_v0 }
 0x3c3   : > { %1620 = vmatmul.mubr.msk.f32.vlgmr.msra.gmra.mxu0 %vm412_vm2, %v888_v34 }
 0x3c4   : > { %1629 = vmatprep.mubr.msk.f32.mxu0 %vm1903_vm0, %v1902_v0  ;;  %1628 = vmatpush3.msra.mxu0 %v1052_v61 }
 0x3c5   : > { %1637 = vmatprep.subr.mxu0 %v1902_v0 }
 0x47b   : > { %v883_v46 = vpop.f32.mrf.mxu1 }
 0x47d   : > { %v1616_v47 = vpop.f32.mrf.mxu1 }
 0x47f   : > { %v810_v48 = vpop.f32.mrf.mxu0 }
 0x480   : > { %v884_v49 = vadd.f32 %v883_v46, %v810_v48 }
 0x481   : > { %v1611_v50 = vpop.f32.mrf.mxu0 }
 0x483   : > { %v961_v51 = vpop.f32.mrf.mxu0 }
 0x484   : > { %v965_v52 = vsel %vm412_vm2, %v961_v51, -inf }
 0x485   : > { %966 = vmax.xlane.f32.xlu1 %v965_v52  ;;  %v1621_v53 = vpop.f32.mrf.mxu0 }
 0x496   : > { %1127 = vrot.lane.b32.xlu1 %v2107_v8, %s1913_s13  ;;  %s1408_s13 = scalar_lea.sflag [#allocation4], %s2074_s29 }
 0x50e   : > { %v967_v54 = vpop.xlane.xlu1 %966 }
 0x50f   : > { %v968_v55 = vsub.f32 %v961_v51, %v967_v54 }
 0x511   : > { %v969_v56 = vmul.f32 1.442695, %v968_v55 }
 0x512   : > { %v1128_v60 = vpop.permute.xlu1 %1127 }
 0x513   : > { %1737 = vpow2.f32 %v969_v56 }
 0x520   : > { %v1738_v57 = vpop.eup %1737 }
 0x521   : > { %1625 = vmatmul.mubr.msk.f32.vlgmr.msra.gmra.mxu1 %vm412_vm2, %v1738_v57  ;;  %v971_v59 = vsel %vm412_vm2, %v1738_v57, 0.0 }
 0x522   : > { %1633 = vmatpush3.xpose.msk.msra.mxu1 %vm412_vm2, %v1130_v58  ;;  %972 = vadd.xlane.f32.xlu1 %v971_v59 }
 0x523   : > { %1634 = vmatprep.mubr.msk.f32.mxu1 %vm1903_vm0, %v1902_v0  ;;  %1642 = vmatprep.subr.mxu1 %v1902_v0 }
 0x525   : > { %1635 = vmatmul.mubr.msk.f32.vlgmr.msra.gmra.mxu1 %vm412_vm2, %v1128_v60 }
 0x526   : > { %1644 = vmatprep.mubr.msk.f32.mxu1 %vm1903_vm0, %v1902_v0  ;;  %1643 = vmatpush3.msra.mxu1 %v1292_v17 }
 0x5ab   : > { %v973_v62 = vpop.xlane.xlu1 %972 }
 0x5ac   : > { %1739 = vrcp.f32 %v973_v62 }
 0x5b9   : > { %v1740_v63 = vpop.eup %1739 }
 0x5e1   : > { %v1046_v1 = vpop.f32.mrf.mxu1 }
 0x5e2   : > { %v1051_v2 = vmul.f32 %v1740_v63, %v1046_v1 }
 0x5e3   : > { %v1626_v3 = vpop.f32.mrf.mxu1 }
 0x5e4   : > { %1630 = vmatmul.mubr.msk.f32.vlgmr.msra.gmra.mxu0 %vm412_vm2, %v1051_v2 }
 0x5e5   : > { %v1201_v4 = vpop.f32.mrf.mxu1  ;;  %1639 = vmatprep.mubr.msk.f32.mxu0 %vm1903_vm0, %v1902_v0 }
 0x5e6   : > { %v1205_v6 = vsel %vm412_vm2, %v1201_v4, -inf }
 0x5e7   : > { %1206 = vmax.xlane.f32.xlu0 %v1205_v6  ;;  %v1636_v7 = vpop.f32.mrf.mxu1 }
 0x5fd   : > { %1214 = vrot.lane.b32.xlu0 %v2107_v8, %s1914_s1  ;;  %s1827_s1 = scalar_lea.vmem %s1422_s16, 128 }
 0x5fe   : > { %p1828_p11 = scmp.ne.s32.totalorder %s1422_s16, %s1827_s1  ;;  %p1835_p12 = scmp.lt.s32.totalorder %s1833_s10, %s1827_s1 }
 0x600   : > { %p1829_p1 = pnand %p1828_p11, %p2252_p0  ;;  %p1836_p7 = por %p1835_p12, %p1834_p6 }
 0x602   : > { %p1830_p2 = pneg %p1829_p1 }
 0x604   : > { %p1837_p9 = pnand %p1836_p7, %p1830_p2 }
 0x670   : > { %v1207_v9 = vpop.xlane.xlu0 %1206 }
 0x671   : > { %v1208_v10 = vsub.f32 %v1201_v4, %v1207_v9 }
 0x673   : > { %v1209_v11 = vmul.f32 1.442695, %v1208_v10 }
 0x674   : > { %v1215_v12 = vpop.permute.xlu0 %1214 }
 0x675   : > { %1741 = vpow2.f32 %v1209_v11  ;;  %1638 = vmatpush3.msra.mxu0 %v1215_v12 }
 0x682   : > { %v1742_v13 = vpop.eup %1741 }
 0x683   : > { %1640 = vmatmul.mubr.msk.f32.vlgmr.msra.gmra.mxu0 %vm412_vm2, %v1742_v13  ;;  %v1211_v14 = vsel %vm412_vm2, %v1742_v13, 0.0 }
 0x684   : > { %1212 = vadd.xlane.f32.xlu1 %v1211_v14 }
 0x6a4   : > { %v1122_v0 = vpop.f32.mrf.mxu0 }
 0x6a5   : > { %v1126_v15 = vadd.f32 %v1122_v0, %v884_v49 }
 0x6a6   : > { %v1631_v16 = vpop.f32.mrf.mxu0 }
 0x70d   : > { %v1213_v18 = vpop.xlane.xlu1 %1212 }
 0x70e   : > { %1743 = vrcp.f32 %v1213_v18 }
 0x71b   : > { %v1744_v8 = vpop.eup %1743 }
 0x743   : > { %v1286_v19 = vpop.f32.mrf.mxu0 }
 0x744   : > { %v1291_v20 = vmul.f32 %v1744_v8, %v1286_v19 }
 0x745   : > { %v1641_v21 = vpop.f32.mrf.mxu0 }
 0x746   : > { %1645 = vmatmul.mubr.msk.f32.vlgmr.msra.gmra.mxu1 %vm412_vm2, %v1291_v20 }
 0x806   : > { %v1362_v22 = vpop.f32.mrf.mxu1 }
 0x807   : > { %v1366_v24 = vadd.f32 %v1362_v22, %v1126_v15 }
 0x808   : > { %v1646_v25 = vpop.f32.mrf.mxu1 }
 0x809   : > { %v1374_v26 = vadd.f32 %v1540_v23, %v1366_v24 }
 0x80b   : > { %v1375_v27 = vadd.f32 %v1374_v26, %v2096_v5  ;;  %v1541_v5 = vld [vmem:[%s2230_s5] ss:$0 sm:$0xff] }
 0x80d   : > { %v1376_v28 = vsel %vm335_vm1, %v1375_v27, 0.0 }
 0x80e   : > { %1377 = vadd.xlane.f32.xlu1 %v1376_v28 }
 0x897   : > { %v1378_v29 = vpop.xlane.xlu1 %1377 }
 0x898   : > { %v1380_v30 = vmul.f32 0.03125, %v1378_v29 }
 0x89a   : > { %v1381_v31 = vsub.f32 %v1375_v27, %v1380_v30 }
 0x89c   : > { %v1382_v32 = vmul.f32 %v1381_v31, %v1381_v31 }
 0x89e   : > { %v1383_v33 = vsel %vm335_vm1, %v1382_v32, 0.0 }
 0x89f   : > { %1384 = vadd.xlane.f32.xlu1 %v1383_v33 }
 0x928   : > { %v1385_v34 = vpop.xlane.xlu1 %1384 }
 0x929   : > { %v1386_v35 = vmul.f32 0.03125, %v1385_v34 }
 0x92b   : > { %v1387_v36 = vadd.f32 1e-05, %v1386_v35 }
 0x92d   : > { %1745 = vrsqrt.f32 %v1387_v36 }
 0x93a   : > { %v1746_v37 = vpop.eup %1745 }
 0x93b   : > { %v1389_v38 = vmul.f32 %v1746_v37, %v1381_v31 }
 0x93d   : > { %v1397_v40 = vmul.f32 %v1541_v5, %v1389_v38 }
 0x93f   : > { %v1405_v41 = vadd.f32 %v1542_v39, %v1397_v40 }
 0x941   : > { %1406 = vst.msk [vmem:[%s322_s14] sm:$0xff] %vm335_vm1, %v1405_v41 }
 0x942   : > { %1840 = shalt.err (!%p1837_p9)
}
 0x943   : > { %s1841_s30 = scalar_lea.hbm %s1419_s19, 128  ;;  %s1845_s18 = scalar_lea.hbm %s2232_s7, 256 }
 0x944   : > { %p1842_p13 = scmp.ne.s32.totalorder %s1419_s19, %s1841_s30  ;;  %p1846_p4 = scmp.lt.s32.totalorder %s1419_s19, %s2232_s7 }
 0x945   : > { %p1847_p8 = scmp.lt.s32.totalorder %s1845_s18, %s1841_s30 }
 0x946   : > { %p1843_p5 = pnand %p1842_p13, %p2252_p0 }
 0x947   : > { %p1848_p3 = por %p1847_p8, %p1846_p4 }
 0x948   : > { %p1844_p10 = pneg %p1843_p5 }
 0x94a   : > { %p1849_p11 = pnand %p1848_p3, %p1844_p10 }
 0x94c   : > { %1852 = shalt.err (!%p1849_p11)
}
 0x94d   : > { %1657 = dma.vmem_to_hbm [thread:$0]  (%p2252_p0), %s1422_s16, 128, %s1419_s19, %s1408_s13  }
 0x94e PF: > { %s1433_s22 = sand.u32 1, %s1883_s24   ;;  %p2253_p1 = scmp.ne.s32.totalorder %s2240_s8, 0 }
 0x94f   : > { %p2254_p2 = scmp.ge.s32.totalorder %s1895_s27, 2  ;;  %s1434_s14 = scalar_lea.sflag [#allocation4], %s1433_s22 }
 0x951   : > { %p1671_p6 = pnand %p2254_p2, %p2253_p1 }
 0x953   : > { %p1672_p12 = pneg %p1671_p6 }
 0x955   : > { %1878 = dma.done.wait (%p1672_p12), %s1434_s14, 128  }
 0x956   : > { %1880 = vsyncadd (%p1672_p12), %s1434_s14, 4294967168  ;;  %p21_p7 = scmp.ge.s32.totalorder %s2028_s23, 4   ;;  %s2255_s24 = smov %s1887_s25 }
 0x957   : > { %s2256_s25 = smov %s1891_s26  ;;  %s2257_s26 = smov %s2044_s12 }
 0x958   : > { %s2258_s27 = smov %s2028_s23  ;;  %23 = sbr.rel (!%p21_p7) target bundleno = 9 (0x9), region = 101 }
 0x95d   :  { %1439 = vsyncpa [#allocation3], 1 }
 0x95e   :  { %1441 = vsyncpa [#allocation3 + $0x1], 1 }
 0x95f   :  { %1442 = vsyncpa [#allocation6], 1 }
 0x960   :  { %1443 = vsyncpa [#allocation4], 1 }
 0x961   :  { %1445 = vsyncpa [#allocation4 + $0x1], 1 }

</bundles_post_ra>
